<compile_context>
chip_gen: v7x
topology: tpu7x:2x2x1
jax: 0.10.0
libtpu: 0.0.40
codegen_flags: <defaults>
</compile_context>

<pallas_src>
import functools

import jax
import jax.numpy as jnp
from jax import lax
from jax.experimental import pallas as pl
from jax.experimental.pallas import tpu as pltpu


def _round_up(x, m):
    return (x + m - 1) // m * m


def _sigmoid(v):
    # exp + approx reciprocal both go to the EUP slot -> keeps the serial
    # LSTM recurrence off the VALU divide chain.
    return pl.reciprocal(1.0 + jnp.exp(-v), approx=True)


def generator_kernel(
    z_ref,      # (Bt, Lp)        bf16  latent batch tile (resident across time chunks)
    wc_ref,     # (St, Lp, 4*Hp)  bf16  folded fc->gates weight, per-timestep slabs (streamed)
    bc_ref,     # (St, 1, 4*Hp)   f32   folded bias (bfc@Wih + bih + bhh)
    whh_ref,    # (Hp, 4*Hp)      bf16  recurrent weight, gate blocks 128-lane aligned
    wout_ref,   # (Hp, Vp)        bf16
    bout_ref,   # (1, Vp)         f32   (-1e30 in padded vocab lanes)
    out_ref,    # (St, Bt, Vp)    f32   time-leading, lane-dense
    h_scr,      # (Bt, Hp)        f32   recurrent carry across time chunks
    c_scr,      # (Bt, Hp)        f32
    gin_scr,    # (St, Bt, 4*Hp)  f32   hoisted input-gate contributions
    hs_scr,     # (St, Bt, Hp)    f32   collected hidden states for deferred fc_out
    *,
    bt: int,
    st: int,
    hp: int,
    vp: int,
):
    # Reset recurrent state at the start of each batch tile's time sweep.
    @pl.when(pl.program_id(1) == 0)
    def _():
        h_scr[...] = jnp.zeros_like(h_scr)
        c_scr[...] = jnp.zeros_like(c_scr)

    z_bf = z_ref[...]
    whh = whh_ref[...]

    # Hoist ALL input-path matmuls out of the serial recurrence.  These St small
    # (Bt,Lp)@(Lp,4Hp) matmuls have no dependency on h/c, so the MXU can run
    # ahead while the recurrence below is latency-bound on gate math.
    for t in range(st):                                   # st is static
        gin_scr[t] = (jnp.dot(z_bf, wc_ref[t], preferred_element_type=jnp.float32)
                      + bc_ref[t])

    def step(t, carry):
        h, c = carry
        gates = (gin_scr[t]
                 + jnp.dot(h.astype(jnp.bfloat16), whh,
                           preferred_element_type=jnp.float32))     # (Bt, 4*Hp) f32
        # Gate slices are whole vregs because H is padded to Hp (multiple of 128).
        i_g = _sigmoid(gates[:, 0 * hp:1 * hp])
        f_g = _sigmoid(gates[:, 1 * hp:2 * hp])
        g_g = jnp.tanh(gates[:, 2 * hp:3 * hp])
        o_g = _sigmoid(gates[:, 3 * hp:4 * hp])
        c = f_g * c + i_g * g_g
        h = o_g * jnp.tanh(c)
        hs_scr[t] = h
        return h, c

    h, c = lax.fori_loop(0, st, step, (h_scr[...], c_scr[...]), unroll=st <= 8)
    h_scr[...] = h
    c_scr[...] = c

    # Deferred fc_out + softmax: ONE (St*Bt, Hp) @ (Hp, Vp) matmul, one softmax,
    # one lane-dense store for the whole chunk (padded vocab lanes exp to 0).
    hs = hs_scr[...].reshape(st * bt, hp)
    logits = (jnp.dot(hs.astype(jnp.bfloat16), wout_ref[...],
                      preferred_element_type=jnp.float32)
              + bout_ref[...])                                       # (St*Bt, Vp)
    m = jnp.max(logits, axis=-1, keepdims=True)
    e = jnp.exp(logits - m)
    inv = pl.reciprocal(jnp.sum(e, axis=-1, keepdims=True), approx=True)
    out_ref[...] = (e * inv).reshape(st, bt, vp)


def pack_params(raw, *, latent_dim, hidden_dim, seq_length, vocab_size):
    """One-time packing: pad / transpose / fold / cast the PyTorch-shaped weights."""
    L, H, S, V = latent_dim, hidden_dim, seq_length, vocab_size
    Hp = _round_up(H, 128)
    Vp = _round_up(V, 128)
    Lp = _round_up(L, 8)

    # fc (H*S, L) -> per-timestep "x @ W" maps (S, L, H).
    wfc = jnp.transpose(raw["wfc"].reshape(S, H, L), (0, 2, 1))       # (S, L, H)
    bfc = raw["bfc"].reshape(S, 1, H)                                 # (S, 1, H)

    # Fold fc into the LSTM input projection (weight-only precompute, fp32):
    #   gates_in[t] = x_t @ Wih^T + b = z @ (wfc[t] @ Wih^T) + (bfc[t] @ Wih^T + b)
    w_ih_x = raw["wih"].T                                             # (H, 4H), cols [i|f|g|o]
    wc = jnp.einsum("slh,hg->slg", wfc, w_ih_x)                       # (S, L, 4H)
    bc = jnp.einsum("sxh,hg->sxg", bfc, w_ih_x) + (raw["bih"] + raw["bhh"])  # (S, 1, 4H)

    def pad_gates_last(a):   # (..., 4H) -> (..., 4*Hp), each gate block lane-aligned
        lead = a.shape[:-1]
        a = a.reshape(lead + (4, H))
        a = jnp.pad(a, [(0, 0)] * len(lead) + [(0, 0), (0, Hp - H)])
        return a.reshape(lead + (4 * Hp,))

    wc = jnp.pad(pad_gates_last(wc), ((0, 0), (0, Lp - L), (0, 0)))   # (S, Lp, 4Hp)
    bc = pad_gates_last(bc)                                           # (S, 1, 4Hp)

    whh = jnp.pad(
        jnp.transpose(raw["whh"].reshape(4, H, H), (2, 0, 1)),        # (H_in, 4, H_out)
        ((0, Hp - H), (0, 0), (0, Hp - H))).reshape(Hp, 4 * Hp)

    wout = jnp.pad(raw["wout"].T, ((0, Hp - H), (0, Vp - V)))
    bout = jnp.pad(raw["bout"].reshape(1, V), ((0, 0), (0, Vp - V)),
                   constant_values=-1e30)   # padded vocab lanes -> softmax 0

    return {
        "wc": wc.astype(jnp.bfloat16),
        "bc": bc.astype(jnp.float32),
        "whh": whh.astype(jnp.bfloat16),
        "wout": wout.astype(jnp.bfloat16),
        "bout": bout.astype(jnp.float32),
    }


def generator_forward(z, packed, *, seq_length, vocab_size,
                      batch_block=None, time_block=None):
    B, L = z.shape
    S, V = seq_length, vocab_size
    Sp, Lp, G = packed["wc"].shape
    Hp = G // 4
    Vp = packed["wout"].shape[1]
    assert Sp == S and Lp >= L

    Bt = batch_block if batch_block is not None else min(_round_up(B, 8), 128)
    Bp = _round_up(B, Bt)
    St = time_block if time_block is not None else S
    assert S % St == 0
    nb, ns = Bp // Bt, S // St

    z_p = jnp.pad(z, ((0, Bp - B), (0, Lp - L))).astype(jnp.bfloat16)

    kernel = functools.partial(generator_kernel, bt=Bt, st=St, hp=Hp, vp=Vp)

    grid_spec = pltpu.PrefetchScalarGridSpec(
        num_scalar_prefetch=0,
        grid=(nb, ns),
        in_specs=[
            pl.BlockSpec((Bt, Lp), lambda b, s: (b, 0)),              # z (resident over s)
            pl.BlockSpec((St, Lp, 4 * Hp), lambda b, s: (s, 0, 0)),   # folded fc->gates W (streamed)
            pl.BlockSpec((St, 1, 4 * Hp), lambda b, s: (s, 0, 0)),    # folded bias
            pl.BlockSpec((Hp, 4 * Hp), lambda b, s: (0, 0)),          # w_hh (resident)
            pl.BlockSpec((Hp, Vp), lambda b, s: (0, 0)),              # w_out (resident)
            pl.BlockSpec((1, Vp), lambda b, s: (0, 0)),               # b_out
        ],
        out_specs=pl.BlockSpec((St, Bt, Vp), lambda b, s: (s, b, 0)),
        scratch_shapes=[
            pltpu.VMEM((Bt, Hp), jnp.float32),            # h carry
            pltpu.VMEM((Bt, Hp), jnp.float32),            # c carry
            pltpu.VMEM((St, Bt, 4 * Hp), jnp.float32),    # hoisted input-gate slab
            pltpu.VMEM((St, Bt, Hp), jnp.float32),        # hidden-state slab
        ],
    )

    out = pl.pallas_call(
        kernel,
        out_shape=jax.ShapeDtypeStruct((S, Bp, Vp), jnp.float32),
        grid_spec=grid_spec,
        compiler_params=pltpu.CompilerParams(
            dimension_semantics=("parallel", "arbitrary"),
            vmem_limit_bytes=32 * 1024 * 1024,
        ),
    )(z_p, packed["wc"], packed["bc"], packed["whh"],
      packed["wout"], packed["bout"])

    # (S, Bp, Vp) time-leading -> batch_first (B, S, V); strip padding.
    return jnp.transpose(out, (1, 0, 2))[:B, :, :V]


def init_params(key, latent_dim, hidden_dim, seq_length, vocab_size):
    """Deterministic synthetic parameters with the same shapes as the PyTorch module."""
    ks = jax.random.split(key, 8)
    H, L, S, V = hidden_dim, latent_dim, seq_length, vocab_size
    scale = 0.1
    return {
        "wfc": jax.random.normal(ks[0], (H * S, L), jnp.float32) * scale,
        "bfc": jax.random.normal(ks[1], (H * S,), jnp.float32) * scale,
        "wih": jax.random.normal(ks[2], (4 * H, H), jnp.float32) * scale,
        "whh": jax.random.normal(ks[3], (4 * H, H), jnp.float32) * scale,
        "bih": jax.random.normal(ks[4], (4 * H,), jnp.float32) * scale,
        "bhh": jax.random.normal(ks[5], (4 * H,), jnp.float32) * scale,
        "wout": jax.random.normal(ks[6], (V, H), jnp.float32) * scale,
        "bout": jax.random.normal(ks[7], (V,), jnp.float32) * scale,
    }


def generator_reference(z, raw, *, hidden_dim, seq_length, vocab_size):
    """Pure-JAX fp32 reference matching the PyTorch module."""
    H, S = hidden_dim, seq_length
    x = z @ raw["wfc"].T + raw["bfc"]
    x = x.reshape(-1, S, H)
    B = x.shape[0]
    h = jnp.zeros((B, H), jnp.float32)
    c = jnp.zeros((B, H), jnp.float32)
    wih_t, whh_t = raw["wih"].T, raw["whh"].T
    bias = raw["bih"] + raw["bhh"]
    hs = []
    for t in range(S):
        gates = x[:, t, :] @ wih_t + h @ whh_t + bias
        i = jax.nn.sigmoid(gates[:, 0 * H:1 * H])
        f = jax.nn.sigmoid(gates[:, 1 * H:2 * H])
        g = jnp.tanh(gates[:, 2 * H:3 * H])
        o = jax.nn.sigmoid(gates[:, 3 * H:4 * H])
        c = f * c + i * g
        h = o * jnp.tanh(c)
        hs.append(h)
    hs = jnp.stack(hs, axis=1)
    logits = hs @ raw["wout"].T + raw["bout"]
    return jax.nn.softmax(logits, axis=-1)


if __name__ == "__main__":
    latent_dim, hidden_dim, seq_length, vocab_size = 16, 32, 8, 16
    batch = 2

    key = jax.random.PRNGKey(0)
    k_param, k_z = jax.random.split(key)
    raw = init_params(k_param, latent_dim, hidden_dim, seq_length, vocab_size)
    packed = pack_params(raw, latent_dim=latent_dim, hidden_dim=hidden_dim,
                         seq_length=seq_length, vocab_size=vocab_size)
    z = jax.random.normal(k_z, (batch, latent_dim), jnp.float32)

    out = generator_forward(
        z, packed,
        seq_length=seq_length, vocab_size=vocab_size,
        time_block=4,   # two time chunks -> exercises the h/c carry across grid steps
    )
    out = jax.block_until_ready(out)

    assert out.shape == (batch, seq_length, vocab_size)
    # softmax rows sum to 1 (approx reciprocal -> loose tolerance)
    assert jnp.allclose(jnp.sum(out, axis=-1), 1.0, atol=1e-2)
    # match the pure-JAX fp32 reference (bf16 matmuls + approx recip -> 2e-2)
    ref = generator_reference(z, raw, hidden_dim=hidden_dim,
                              seq_length=seq_length, vocab_size=vocab_size)
    assert jnp.allclose(out, ref, atol=2e-2), float(jnp.max(jnp.abs(out - ref)))
    print("KERNEL_OK")
</pallas_src>

<mosaic_0001>
module attributes {stable_mosaic.version = 11 : i64} {
  func.func @generator_kernel(%arg0: i32, %arg1: i32, %arg2: memref<8x16xbf16, #tpu.memory_space<vmem>>, %arg3: memref<4x16x512xbf16, #tpu.memory_space<vmem>>, %arg4: memref<4x1x512xf32, #tpu.memory_space<vmem>>, %arg5: memref<128x512xbf16, #tpu.memory_space<vmem>>, %arg6: memref<128x128xbf16, #tpu.memory_space<vmem>>, %arg7: memref<1x128xf32, #tpu.memory_space<vmem>>, %arg8: memref<4x8x128xf32, #tpu.memory_space<vmem>>, %arg9: memref<8x128xf32, #tpu.memory_space<vmem>>, %arg10: memref<8x128xf32, #tpu.memory_space<vmem>>, %arg11: memref<4x8x512xf32, #tpu.memory_space<vmem>>, %arg12: memref<4x8x128xf32, #tpu.memory_space<vmem>>) attributes {dimension_semantics = [#tpu.dimension_semantics<parallel>, #tpu.dimension_semantics<arbitrary>], iteration_bounds = array<i64: 1, 2>, scalar_prefetch = 0 : i64, scratch_operands = 4 : i64, tpu.core_type = #tpu.core_type<tc>, window_params = [{transform_indices = @transform_0, window_bounds = array<i64: 8, 16>}, {transform_indices = @transform_1, window_bounds = array<i64: 4, 16, 512>}, {transform_indices = @transform_2, window_bounds = array<i64: 4, 1, 512>}, {pipeline_mode = #tpu.pipeline_mode<synchronous>, transform_indices = @transform_3, window_bounds = array<i64: 128, 512>}, {pipeline_mode = #tpu.pipeline_mode<synchronous>, transform_indices = @transform_4, window_bounds = array<i64: 128, 128>}, {pipeline_mode = #tpu.pipeline_mode<synchronous>, transform_indices = @transform_5, window_bounds = array<i64: 1, 128>}, {transform_indices = @transform_6, window_bounds = array<i64: 4, 8, 128>}]} {
    %c0_i32 = arith.constant 0 : i32
    %0 = arith.cmpi eq, %arg1, %c0_i32 : i32
    %1 = arith.extui %0 : i1 to i32
    %c0_i32_0 = arith.constant 0 : i32
    %2 = arith.cmpi ne, %1, %c0_i32_0 : i32
    scf.if %2 {
      %cst_106 = arith.constant 0.000000e+00 : f32
      %221 = vector.broadcast %cst_106 : f32 to vector<8x128xf32>
      %c0_107 = arith.constant 0 : index
      %c0_108 = arith.constant 0 : index
      %222 = vector.load %arg9[%c0_107, %c0_108] : memref<8x128xf32, #tpu.memory_space<vmem>>, vector<8x128xf32>
      tpu.vector_store %arg9[%c0_107, %c0_108], %221 {strides = array<i32>} : memref<8x128xf32, #tpu.memory_space<vmem>>, vector<8x128xf32>,
      %cst_109 = arith.constant 0.000000e+00 : f32
      %223 = vector.broadcast %cst_109 : f32 to vector<8x128xf32>
      %c0_110 = arith.constant 0 : index
      %c0_111 = arith.constant 0 : index
      %224 = vector.load %arg10[%c0_110, %c0_111] : memref<8x128xf32, #tpu.memory_space<vmem>>, vector<8x128xf32>
      tpu.vector_store %arg10[%c0_110, %c0_111], %223 {strides = array<i32>} : memref<8x128xf32, #tpu.memory_space<vmem>>, vector<8x128xf32>,
    } else {
    }
    %c0 = arith.constant 0 : index
    %c0_1 = arith.constant 0 : index
    %3 = vector.load %arg2[%c0, %c0_1] : memref<8x16xbf16, #tpu.memory_space<vmem>>, vector<8x16xbf16>
    %c0_2 = arith.constant 0 : index
    %c0_3 = arith.constant 0 : index
    %4 = vector.load %arg5[%c0_2, %c0_3] : memref<128x512xbf16, #tpu.memory_space<vmem>>, vector<128x512xbf16>
    %c0_4 = arith.constant 0 : index
    %c0_5 = arith.constant 0 : index
    %c0_6 = arith.constant 0 : index
    %5 = vector.load %arg3[%c0_4, %c0_5, %c0_6] : memref<4x16x512xbf16, #tpu.memory_space<vmem>>, vector<1x16x512xbf16>
    %6 = vector.shape_cast %5 : vector<1x16x512xbf16> to vector<16x512xbf16>
    %cst = arith.constant dense<0.000000e+00> : vector<8x512xf32>
    %7 = tpu.matmul %3, %6, %cst {dimension_numbers = #tpu.dot_dimension_numbers<[1], [0], [0], [1], [0, 0, 1, 1], [], []>} : vector<8x16xbf16>, vector<16x512xbf16>, vector<8x512xf32> -> vector<8x512xf32>
    %c0_7 = arith.constant 0 : index
    %c0_8 = arith.constant 0 : index
    %c0_9 = arith.constant 0 : index
    %8 = vector.load %arg4[%c0_7, %c0_8, %c0_9] : memref<4x1x512xf32, #tpu.memory_space<vmem>>, vector<1x1x512xf32>
    %9 = vector.shape_cast %8 : vector<1x1x512xf32> to vector<1x512xf32>
    %10 = vector.broadcast %9 : vector<1x512xf32> to vector<8x512xf32>
    %11 = arith.addf %7, %10 : vector<8x512xf32>
    %c0_10 = arith.constant 0 : index
    %c0_11 = arith.constant 0 : index
    %c0_12 = arith.constant 0 : index
    %12 = vector.load %arg11[%c0_10, %c0_11, %c0_12] : memref<4x8x512xf32, #tpu.memory_space<vmem>>, vector<1x8x512xf32>
    %13 = vector.shape_cast %12 : vector<1x8x512xf32> to vector<8x512xf32>
    %14 = vector.shape_cast %11 : vector<8x512xf32> to vector<1x8x512xf32>
    tpu.vector_store %arg11[%c0_10, %c0_11, %c0_12], %14 {strides = array<i32>} : memref<4x8x512xf32, #tpu.memory_space<vmem>>, vector<1x8x512xf32>,
    %c1 = arith.constant 1 : index
    %c0_13 = arith.constant 0 : index
    %c0_14 = arith.constant 0 : index
    %15 = vector.load %arg3[%c1, %c0_13, %c0_14] : memref<4x16x512xbf16, #tpu.memory_space<vmem>>, vector<1x16x512xbf16>
    %16 = vector.shape_cast %15 : vector<1x16x512xbf16> to vector<16x512xbf16>
    %cst_15 = arith.constant dense<0.000000e+00> : vector<8x512xf32>
    %17 = tpu.matmul %3, %16, %cst_15 {dimension_numbers = #tpu.dot_dimension_numbers<[1], [0], [0], [1], [0, 0, 1, 1], [], []>} : vector<8x16xbf16>, vector<16x512xbf16>, vector<8x512xf32> -> vector<8x512xf32>
    %c1_16 = arith.constant 1 : index
    %c0_17 = arith.constant 0 : index
    %c0_18 = arith.constant 0 : index
    %18 = vector.load %arg4[%c1_16, %c0_17, %c0_18] : memref<4x1x512xf32, #tpu.memory_space<vmem>>, vector<1x1x512xf32>
    %19 = vector.shape_cast %18 : vector<1x1x512xf32> to vector<1x512xf32>
    %20 = vector.broadcast %19 : vector<1x512xf32> to vector<8x512xf32>
    %21 = arith.addf %17, %20 : vector<8x512xf32>
    %c1_19 = arith.constant 1 : index
    %c0_20 = arith.constant 0 : index
    %c0_21 = arith.constant 0 : index
    %22 = vector.load %arg11[%c1_19, %c0_20, %c0_21] : memref<4x8x512xf32, #tpu.memory_space<vmem>>, vector<1x8x512xf32>
    %23 = vector.shape_cast %22 : vector<1x8x512xf32> to vector<8x512xf32>
    %24 = vector.shape_cast %21 : vector<8x512xf32> to vector<1x8x512xf32>
    tpu.vector_store %arg11[%c1_19, %c0_20, %c0_21], %24 {strides = array<i32>} : memref<4x8x512xf32, #tpu.memory_space<vmem>>, vector<1x8x512xf32>,
    %c2 = arith.constant 2 : index
    %c0_22 = arith.constant 0 : index
    %c0_23 = arith.constant 0 : index
    %25 = vector.load %arg3[%c2, %c0_22, %c0_23] : memref<4x16x512xbf16, #tpu.memory_space<vmem>>, vector<1x16x512xbf16>
    %26 = vector.shape_cast %25 : vector<1x16x512xbf16> to vector<16x512xbf16>
    %cst_24 = arith.constant dense<0.000000e+00> : vector<8x512xf32>
    %27 = tpu.matmul %3, %26, %cst_24 {dimension_numbers = #tpu.dot_dimension_numbers<[1], [0], [0], [1], [0, 0, 1, 1], [], []>} : vector<8x16xbf16>, vector<16x512xbf16>, vector<8x512xf32> -> vector<8x512xf32>
    %c2_25 = arith.constant 2 : index
    %c0_26 = arith.constant 0 : index
    %c0_27 = arith.constant 0 : index
    %28 = vector.load %arg4[%c2_25, %c0_26, %c0_27] : memref<4x1x512xf32, #tpu.memory_space<vmem>>, vector<1x1x512xf32>
    %29 = vector.shape_cast %28 : vector<1x1x512xf32> to vector<1x512xf32>
    %30 = vector.broadcast %29 : vector<1x512xf32> to vector<8x512xf32>
    %31 = arith.addf %27, %30 : vector<8x512xf32>
    %c2_28 = arith.constant 2 : index
    %c0_29 = arith.constant 0 : index
    %c0_30 = arith.constant 0 : index
    %32 = vector.load %arg11[%c2_28, %c0_29, %c0_30] : memref<4x8x512xf32, #tpu.memory_space<vmem>>, vector<1x8x512xf32>
    %33 = vector.shape_cast %32 : vector<1x8x512xf32> to vector<8x512xf32>
    %34 = vector.shape_cast %31 : vector<8x512xf32> to vector<1x8x512xf32>
    tpu.vector_store %arg11[%c2_28, %c0_29, %c0_30], %34 {strides = array<i32>} : memref<4x8x512xf32, #tpu.memory_space<vmem>>, vector<1x8x512xf32>,
    %c3 = arith.constant 3 : index
    %c0_31 = arith.constant 0 : index
    %c0_32 = arith.constant 0 : index
    %35 = vector.load %arg3[%c3, %c0_31, %c0_32] : memref<4x16x512xbf16, #tpu.memory_space<vmem>>, vector<1x16x512xbf16>
    %36 = vector.shape_cast %35 : vector<1x16x512xbf16> to vector<16x512xbf16>
    %cst_33 = arith.constant dense<0.000000e+00> : vector<8x512xf32>
    %37 = tpu.matmul %3, %36, %cst_33 {dimension_numbers = #tpu.dot_dimension_numbers<[1], [0], [0], [1], [0, 0, 1, 1], [], []>} : vector<8x16xbf16>, vector<16x512xbf16>, vector<8x512xf32> -> vector<8x512xf32>
    %c3_34 = arith.constant 3 : index
    %c0_35 = arith.constant 0 : index
    %c0_36 = arith.constant 0 : index
    %38 = vector.load %arg4[%c3_34, %c0_35, %c0_36] : memref<4x1x512xf32, #tpu.memory_space<vmem>>, vector<1x1x512xf32>
    %39 = vector.shape_cast %38 : vector<1x1x512xf32> to vector<1x512xf32>
    %40 = vector.broadcast %39 : vector<1x512xf32> to vector<8x512xf32>
    %41 = arith.addf %37, %40 : vector<8x512xf32>
    %c3_37 = arith.constant 3 : index
    %c0_38 = arith.constant 0 : index
    %c0_39 = arith.constant 0 : index
    %42 = vector.load %arg11[%c3_37, %c0_38, %c0_39] : memref<4x8x512xf32, #tpu.memory_space<vmem>>, vector<1x8x512xf32>
    %43 = vector.shape_cast %42 : vector<1x8x512xf32> to vector<8x512xf32>
    %44 = vector.shape_cast %41 : vector<8x512xf32> to vector<1x8x512xf32>
    tpu.vector_store %arg11[%c3_37, %c0_38, %c0_39], %44 {strides = array<i32>} : memref<4x8x512xf32, #tpu.memory_space<vmem>>, vector<1x8x512xf32>,
    %c0_40 = arith.constant 0 : index
    %c0_41 = arith.constant 0 : index
    %45 = vector.load %arg9[%c0_40, %c0_41] : memref<8x128xf32, #tpu.memory_space<vmem>>, vector<8x128xf32>
    %c0_42 = arith.constant 0 : index
    %c0_43 = arith.constant 0 : index
    %46 = vector.load %arg10[%c0_42, %c0_43] : memref<8x128xf32, #tpu.memory_space<vmem>>, vector<8x128xf32>
    %c0_i32_44 = arith.constant 0 : i32
    %47 = arith.index_cast %c0_i32_44 : i32 to index
    %c0_45 = arith.constant 0 : index
    %c0_46 = arith.constant 0 : index
    %48 = vector.load %arg11[%47, %c0_45, %c0_46] : memref<4x8x512xf32, #tpu.memory_space<vmem>>, vector<1x8x512xf32>
    %49 = vector.shape_cast %48 : vector<1x8x512xf32> to vector<8x512xf32>
    %50 = arith.truncf %45 : vector<8x128xf32> to vector<8x128xbf16>
    %cst_47 = arith.constant dense<0.000000e+00> : vector<8x512xf32>
    %51 = tpu.matmul %50, %4, %cst_47 {dimension_numbers = #tpu.dot_dimension_numbers<[1], [0], [0], [1], [0, 0, 1, 1], [], []>} : vector<8x128xbf16>, vector<128x512xbf16>, vector<8x512xf32> -> vector<8x512xf32>
    %52 = arith.addf %49, %51 : vector<8x512xf32>
    %53 = vector.extract_strided_slice %52 {offsets = [0, 0], sizes = [8, 128], strides = [1, 1]} : vector<8x512xf32> to vector<8x128xf32>
    %cst_48 = arith.constant 0.000000e+00 : f32
    %54 = vector.broadcast %cst_48 : f32 to vector<8x128xf32>
    %55 = arith.subf %54, %53 : vector<8x128xf32>
    %56 = math.exp %55 : vector<8x128xf32>
    %cst_49 = arith.constant 1.000000e+00 : f32
    %57 = vector.broadcast %cst_49 : f32 to vector<8x128xf32>
    %58 = arith.addf %57, %56 : vector<8x128xf32>
    %59 = tpu.reciprocal %58 {approx = true} : vector<8x128xf32> -> vector<8x128xf32>
    %60 = vector.extract_strided_slice %52 {offsets = [0, 128], sizes = [8, 128], strides = [1, 1]} : vector<8x512xf32> to vector<8x128xf32>
    %cst_50 = arith.constant 0.000000e+00 : f32
    %61 = vector.broadcast %cst_50 : f32 to vector<8x128xf32>
    %62 = arith.subf %61, %60 : vector<8x128xf32>
    %63 = math.exp %62 : vector<8x128xf32>
    %cst_51 = arith.constant 1.000000e+00 : f32
    %64 = vector.broadcast %cst_51 : f32 to vector<8x128xf32>
    %65 = arith.addf %64, %63 : vector<8x128xf32>
    %66 = tpu.reciprocal %65 {approx = true} : vector<8x128xf32> -> vector<8x128xf32>
    %67 = vector.extract_strided_slice %52 {offsets = [0, 256], sizes = [8, 128], strides = [1, 1]} : vector<8x512xf32> to vector<8x128xf32>
    %68 = math.tanh %67 : vector<8x128xf32>
    %69 = vector.extract_strided_slice %52 {offsets = [0, 384], sizes = [8, 128], strides = [1, 1]} : vector<8x512xf32> to vector<8x128xf32>
    %cst_52 = arith.constant 0.000000e+00 : f32
    %70 = vector.broadcast %cst_52 : f32 to vector<8x128xf32>
    %71 = arith.subf %70, %69 : vector<8x128xf32>
    %72 = math.exp %71 : vector<8x128xf32>
    %cst_53 = arith.constant 1.000000e+00 : f32
    %73 = vector.broadcast %cst_53 : f32 to vector<8x128xf32>
    %74 = arith.addf %73, %72 : vector<8x128xf32>
    %75 = tpu.reciprocal %74 {approx = true} : vector<8x128xf32> -> vector<8x128xf32>
    %76 = arith.mulf %66, %46 : vector<8x128xf32>
    %77 = arith.mulf %59, %68 : vector<8x128xf32>
    %78 = arith.addf %76, %77 : vector<8x128xf32>
    %79 = math.tanh %78 : vector<8x128xf32>
    %80 = arith.mulf %75, %79 : vector<8x128xf32>
    %81 = arith.index_cast %c0_i32_44 : i32 to index
    %c0_54 = arith.constant 0 : index
    %c0_55 = arith.constant 0 : index
    %82 = vector.load %arg12[%81, %c0_54, %c0_55] : memref<4x8x128xf32, #tpu.memory_space<vmem>>, vector<1x8x128xf32>
    %83 = vector.shape_cast %82 : vector<1x8x128xf32> to vector<8x128xf32>
    %84 = vector.shape_cast %80 : vector<8x128xf32> to vector<1x8x128xf32>
    tpu.vector_store %arg12[%81, %c0_54, %c0_55], %84 {strides = array<i32>} : memref<4x8x128xf32, #tpu.memory_space<vmem>>, vector<1x8x128xf32>,
    %c1_i32 = arith.constant 1 : i32
    %85 = arith.index_cast %c1_i32 : i32 to index
    %c0_56 = arith.constant 0 : index
    %c0_57 = arith.constant 0 : index
    %86 = vector.load %arg11[%85, %c0_56, %c0_57] : memref<4x8x512xf32, #tpu.memory_space<vmem>>, vector<1x8x512xf32>
    %87 = vector.shape_cast %86 : vector<1x8x512xf32> to vector<8x512xf32>
    %88 = arith.truncf %80 : vector<8x128xf32> to vector<8x128xbf16>
    %cst_58 = arith.constant dense<0.000000e+00> : vector<8x512xf32>
    %89 = tpu.matmul %88, %4, %cst_58 {dimension_numbers = #tpu.dot_dimension_numbers<[1], [0], [0], [1], [0, 0, 1, 1], [], []>} : vector<8x128xbf16>, vector<128x512xbf16>, vector<8x512xf32> -> vector<8x512xf32>
    %90 = arith.addf %87, %89 : vector<8x512xf32>
    %91 = vector.extract_strided_slice %90 {offsets = [0, 0], sizes = [8, 128], strides = [1, 1]} : vector<8x512xf32> to vector<8x128xf32>
    %cst_59 = arith.constant 0.000000e+00 : f32
    %92 = vector.broadcast %cst_59 : f32 to vector<8x128xf32>
    %93 = arith.subf %92, %91 : vector<8x128xf32>
    %94 = math.exp %93 : vector<8x128xf32>
    %cst_60 = arith.constant 1.000000e+00 : f32
    %95 = vector.broadcast %cst_60 : f32 to vector<8x128xf32>
    %96 = arith.addf %95, %94 : vector<8x128xf32>
    %97 = tpu.reciprocal %96 {approx = true} : vector<8x128xf32> -> vector<8x128xf32>
    %98 = vector.extract_strided_slice %90 {offsets = [0, 128], sizes = [8, 128], strides = [1, 1]} : vector<8x512xf32> to vector<8x128xf32>
    %cst_61 = arith.constant 0.000000e+00 : f32
    %99 = vector.broadcast %cst_61 : f32 to vector<8x128xf32>
    %100 = arith.subf %99, %98 : vector<8x128xf32>
    %101 = math.exp %100 : vector<8x128xf32>
    %cst_62 = arith.constant 1.000000e+00 : f32
    %102 = vector.broadcast %cst_62 : f32 to vector<8x128xf32>
    %103 = arith.addf %102, %101 : vector<8x128xf32>
    %104 = tpu.reciprocal %103 {approx = true} : vector<8x128xf32> -> vector<8x128xf32>
    %105 = vector.extract_strided_slice %90 {offsets = [0, 256], sizes = [8, 128], strides = [1, 1]} : vector<8x512xf32> to vector<8x128xf32>
    %106 = math.tanh %105 : vector<8x128xf32>
    %107 = vector.extract_strided_slice %90 {offsets = [0, 384], sizes = [8, 128], strides = [1, 1]} : vector<8x512xf32> to vector<8x128xf32>
    %cst_63 = arith.constant 0.000000e+00 : f32
    %108 = vector.broadcast %cst_63 : f32 to vector<8x128xf32>
    %109 = arith.subf %108, %107 : vector<8x128xf32>
    %110 = math.exp %109 : vector<8x128xf32>
    %cst_64 = arith.constant 1.000000e+00 : f32
    %111 = vector.broadcast %cst_64 : f32 to vector<8x128xf32>
    %112 = arith.addf %111, %110 : vector<8x128xf32>
    %113 = tpu.reciprocal %112 {approx = true} : vector<8x128xf32> -> vector<8x128xf32>
    %114 = arith.mulf %104, %78 : vector<8x128xf32>
    %115 = arith.mulf %97, %106 : vector<8x128xf32>
    %116 = arith.addf %114, %115 : vector<8x128xf32>
    %117 = math.tanh %116 : vector<8x128xf32>
    %118 = arith.mulf %113, %117 : vector<8x128xf32>
    %119 = arith.index_cast %c1_i32 : i32 to index
    %c0_65 = arith.constant 0 : index
    %c0_66 = arith.constant 0 : index
    %120 = vector.load %arg12[%119, %c0_65, %c0_66] : memref<4x8x128xf32, #tpu.memory_space<vmem>>, vector<1x8x128xf32>
    %121 = vector.shape_cast %120 : vector<1x8x128xf32> to vector<8x128xf32>
    %122 = vector.shape_cast %118 : vector<8x128xf32> to vector<1x8x128xf32>
    tpu.vector_store %arg12[%119, %c0_65, %c0_66], %122 {strides = array<i32>} : memref<4x8x128xf32, #tpu.memory_space<vmem>>, vector<1x8x128xf32>,
    %c2_i32 = arith.constant 2 : i32
    %123 = arith.index_cast %c2_i32 : i32 to index
    %c0_67 = arith.constant 0 : index
    %c0_68 = arith.constant 0 : index
    %124 = vector.load %arg11[%123, %c0_67, %c0_68] : memref<4x8x512xf32, #tpu.memory_space<vmem>>, vector<1x8x512xf32>
    %125 = vector.shape_cast %124 : vector<1x8x512xf32> to vector<8x512xf32>
    %126 = arith.truncf %118 : vector<8x128xf32> to vector<8x128xbf16>
    %cst_69 = arith.constant dense<0.000000e+00> : vector<8x512xf32>
    %127 = tpu.matmul %126, %4, %cst_69 {dimension_numbers = #tpu.dot_dimension_numbers<[1], [0], [0], [1], [0, 0, 1, 1], [], []>} : vector<8x128xbf16>, vector<128x512xbf16>, vector<8x512xf32> -> vector<8x512xf32>
    %128 = arith.addf %125, %127 : vector<8x512xf32>
    %129 = vector.extract_strided_slice %128 {offsets = [0, 0], sizes = [8, 128], strides = [1, 1]} : vector<8x512xf32> to vector<8x128xf32>
    %cst_70 = arith.constant 0.000000e+00 : f32
    %130 = vector.broadcast %cst_70 : f32 to vector<8x128xf32>
    %131 = arith.subf %130, %129 : vector<8x128xf32>
    %132 = math.exp %131 : vector<8x128xf32>
    %cst_71 = arith.constant 1.000000e+00 : f32
    %133 = vector.broadcast %cst_71 : f32 to vector<8x128xf32>
    %134 = arith.addf %133, %132 : vector<8x128xf32>
    %135 = tpu.reciprocal %134 {approx = true} : vector<8x128xf32> -> vector<8x128xf32>
    %136 = vector.extract_strided_slice %128 {offsets = [0, 128], sizes = [8, 128], strides = [1, 1]} : vector<8x512xf32> to vector<8x128xf32>
    %cst_72 = arith.constant 0.000000e+00 : f32
    %137 = vector.broadcast %cst_72 : f32 to vector<8x128xf32>
    %138 = arith.subf %137, %136 : vector<8x128xf32>
    %139 = math.exp %138 : vector<8x128xf32>
    %cst_73 = arith.constant 1.000000e+00 : f32
    %140 = vector.broadcast %cst_73 : f32 to vector<8x128xf32>
    %141 = arith.addf %140, %139 : vector<8x128xf32>
    %142 = tpu.reciprocal %141 {approx = true} : vector<8x128xf32> -> vector<8x128xf32>
    %143 = vector.extract_strided_slice %128 {offsets = [0, 256], sizes = [8, 128], strides = [1, 1]} : vector<8x512xf32> to vector<8x128xf32>
    %144 = math.tanh %143 : vector<8x128xf32>
    %145 = vector.extract_strided_slice %128 {offsets = [0, 384], sizes = [8, 128], strides = [1, 1]} : vector<8x512xf32> to vector<8x128xf32>
    %cst_74 = arith.constant 0.000000e+00 : f32
    %146 = vector.broadcast %cst_74 : f32 to vector<8x128xf32>
    %147 = arith.subf %146, %145 : vector<8x128xf32>
    %148 = math.exp %147 : vector<8x128xf32>
    %cst_75 = arith.constant 1.000000e+00 : f32
    %149 = vector.broadcast %cst_75 : f32 to vector<8x128xf32>
    %150 = arith.addf %149, %148 : vector<8x128xf32>
    %151 = tpu.reciprocal %150 {approx = true} : vector<8x128xf32> -> vector<8x128xf32>
    %152 = arith.mulf %142, %116 : vector<8x128xf32>
    %153 = arith.mulf %135, %144 : vector<8x128xf32>
    %154 = arith.addf %152, %153 : vector<8x128xf32>
    %155 = math.tanh %154 : vector<8x128xf32>
    %156 = arith.mulf %151, %155 : vector<8x128xf32>
    %157 = arith.index_cast %c2_i32 : i32 to index
    %c0_76 = arith.constant 0 : index
    %c0_77 = arith.constant 0 : index
    %158 = vector.load %arg12[%157, %c0_76, %c0_77] : memref<4x8x128xf32, #tpu.memory_space<vmem>>, vector<1x8x128xf32>
    %159 = vector.shape_cast %158 : vector<1x8x128xf32> to vector<8x128xf32>
    %160 = vector.shape_cast %156 : vector<8x128xf32> to vector<1x8x128xf32>
    tpu.vector_store %arg12[%157, %c0_76, %c0_77], %160 {strides = array<i32>} : memref<4x8x128xf32, #tpu.memory_space<vmem>>, vector<1x8x128xf32>,
    %c3_i32 = arith.constant 3 : i32
    %161 = arith.index_cast %c3_i32 : i32 to index
    %c0_78 = arith.constant 0 : index
    %c0_79 = arith.constant 0 : index
    %162 = vector.load %arg11[%161, %c0_78, %c0_79] : memref<4x8x512xf32, #tpu.memory_space<vmem>>, vector<1x8x512xf32>
    %163 = vector.shape_cast %162 : vector<1x8x512xf32> to vector<8x512xf32>
    %164 = arith.truncf %156 : vector<8x128xf32> to vector<8x128xbf16>
    %cst_80 = arith.constant dense<0.000000e+00> : vector<8x512xf32>
    %165 = tpu.matmul %164, %4, %cst_80 {dimension_numbers = #tpu.dot_dimension_numbers<[1], [0], [0], [1], [0, 0, 1, 1], [], []>} : vector<8x128xbf16>, vector<128x512xbf16>, vector<8x512xf32> -> vector<8x512xf32>
    %166 = arith.addf %163, %165 : vector<8x512xf32>
    %167 = vector.extract_strided_slice %166 {offsets = [0, 0], sizes = [8, 128], strides = [1, 1]} : vector<8x512xf32> to vector<8x128xf32>
    %cst_81 = arith.constant 0.000000e+00 : f32
    %168 = vector.broadcast %cst_81 : f32 to vector<8x128xf32>
    %169 = arith.subf %168, %167 : vector<8x128xf32>
    %170 = math.exp %169 : vector<8x128xf32>
    %cst_82 = arith.constant 1.000000e+00 : f32
    %171 = vector.broadcast %cst_82 : f32 to vector<8x128xf32>
    %172 = arith.addf %171, %170 : vector<8x128xf32>
    %173 = tpu.reciprocal %172 {approx = true} : vector<8x128xf32> -> vector<8x128xf32>
    %174 = vector.extract_strided_slice %166 {offsets = [0, 128], sizes = [8, 128], strides = [1, 1]} : vector<8x512xf32> to vector<8x128xf32>
    %cst_83 = arith.constant 0.000000e+00 : f32
    %175 = vector.broadcast %cst_83 : f32 to vector<8x128xf32>
    %176 = arith.subf %175, %174 : vector<8x128xf32>
    %177 = math.exp %176 : vector<8x128xf32>
    %cst_84 = arith.constant 1.000000e+00 : f32
    %178 = vector.broadcast %cst_84 : f32 to vector<8x128xf32>
    %179 = arith.addf %178, %177 : vector<8x128xf32>
    %180 = tpu.reciprocal %179 {approx = true} : vector<8x128xf32> -> vector<8x128xf32>
    %181 = vector.extract_strided_slice %166 {offsets = [0, 256], sizes = [8, 128], strides = [1, 1]} : vector<8x512xf32> to vector<8x128xf32>
    %182 = math.tanh %181 : vector<8x128xf32>
    %183 = vector.extract_strided_slice %166 {offsets = [0, 384], sizes = [8, 128], strides = [1, 1]} : vector<8x512xf32> to vector<8x128xf32>
    %cst_85 = arith.constant 0.000000e+00 : f32
    %184 = vector.broadcast %cst_85 : f32 to vector<8x128xf32>
    %185 = arith.subf %184, %183 : vector<8x128xf32>
    %186 = math.exp %185 : vector<8x128xf32>
    %cst_86 = arith.constant 1.000000e+00 : f32
    %187 = vector.broadcast %cst_86 : f32 to vector<8x128xf32>
    %188 = arith.addf %187, %186 : vector<8x128xf32>
    %189 = tpu.reciprocal %188 {approx = true} : vector<8x128xf32> -> vector<8x128xf32>
    %190 = arith.mulf %180, %154 : vector<8x128xf32>
    %191 = arith.mulf %173, %182 : vector<8x128xf32>
    %192 = arith.addf %190, %191 : vector<8x128xf32>
    %193 = math.tanh %192 : vector<8x128xf32>
    %194 = arith.mulf %189, %193 : vector<8x128xf32>
    %195 = arith.index_cast %c3_i32 : i32 to index
    %c0_87 = arith.constant 0 : index
    %c0_88 = arith.constant 0 : index
    %196 = vector.load %arg12[%195, %c0_87, %c0_88] : memref<4x8x128xf32, #tpu.memory_space<vmem>>, vector<1x8x128xf32>
    %197 = vector.shape_cast %196 : vector<1x8x128xf32> to vector<8x128xf32>
    %198 = vector.shape_cast %194 : vector<8x128xf32> to vector<1x8x128xf32>
    tpu.vector_store %arg12[%195, %c0_87, %c0_88], %198 {strides = array<i32>} : memref<4x8x128xf32, #tpu.memory_space<vmem>>, vector<1x8x128xf32>,
    %c4_i32 = arith.constant 4 : i32
    %c0_89 = arith.constant 0 : index
    %c0_90 = arith.constant 0 : index
    %199 = vector.load %arg9[%c0_89, %c0_90] : memref<8x128xf32, #tpu.memory_space<vmem>>, vector<8x128xf32>
    tpu.vector_store %arg9[%c0_89, %c0_90], %194 {strides = array<i32>} : memref<8x128xf32, #tpu.memory_space<vmem>>, vector<8x128xf32>,
    %c0_91 = arith.constant 0 : index
    %c0_92 = arith.constant 0 : index
    %200 = vector.load %arg10[%c0_91, %c0_92] : memref<8x128xf32, #tpu.memory_space<vmem>>, vector<8x128xf32>
    tpu.vector_store %arg10[%c0_91, %c0_92], %192 {strides = array<i32>} : memref<8x128xf32, #tpu.memory_space<vmem>>, vector<8x128xf32>,
    %c0_93 = arith.constant 0 : index
    %c0_94 = arith.constant 0 : index
    %c0_95 = arith.constant 0 : index
    %201 = vector.load %arg12[%c0_93, %c0_94, %c0_95] : memref<4x8x128xf32, #tpu.memory_space<vmem>>, vector<4x8x128xf32>
    %202 = vector.shape_cast %201 : vector<4x8x128xf32> to vector<32x128xf32>
    %203 = arith.truncf %202 : vector<32x128xf32> to vector<32x128xbf16>
    %c0_96 = arith.constant 0 : index
    %c0_97 = arith.constant 0 : index
    %204 = vector.load %arg6[%c0_96, %c0_97] : memref<128x128xbf16, #tpu.memory_space<vmem>>, vector<128x128xbf16>
    %cst_98 = arith.constant dense<0.000000e+00> : vector<32x128xf32>
    %205 = tpu.matmul %203, %204, %cst_98 {dimension_numbers = #tpu.dot_dimension_numbers<[1], [0], [0], [1], [0, 0, 1, 1], [], []>} : vector<32x128xbf16>, vector<128x128xbf16>, vector<32x128xf32> -> vector<32x128xf32>
    %c0_99 = arith.constant 0 : index
    %c0_100 = arith.constant 0 : index
    %206 = vector.load %arg7[%c0_99, %c0_100] : memref<1x128xf32, #tpu.memory_space<vmem>>, vector<1x128xf32>
    %207 = vector.broadcast %206 : vector<1x128xf32> to vector<32x128xf32>
    %208 = arith.addf %205, %207 : vector<32x128xf32>
    %cst_101 = arith.constant dense<0xFF800000> : vector<32xf32>
    %209 = vector.multi_reduction <maximumf>, %208, %cst_101 [1] : vector<32x128xf32> to vector<32xf32>
    %210 = vector.shape_cast %209 : vector<32xf32> to vector<32x1xf32>
    %211 = vector.broadcast %210 : vector<32x1xf32> to vector<32x128xf32>
    %212 = arith.subf %208, %211 : vector<32x128xf32>
    %213 = math.exp %212 : vector<32x128xf32>
    %cst_102 = arith.constant dense<0.000000e+00> : vector<32xf32>
    %214 = vector.multi_reduction <add>, %213, %cst_102 [1] : vector<32x128xf32> to vector<32xf32>
    %215 = vector.shape_cast %214 : vector<32xf32> to vector<32x1xf32>
    %216 = tpu.reciprocal %215 {approx = true} : vector<32x1xf32> -> vector<32x1xf32>
    %217 = vector.broadcast %216 : vector<32x1xf32> to vector<32x128xf32>
    %218 = arith.mulf %213, %217 : vector<32x128xf32>
    %219 = vector.shape_cast %218 : vector<32x128xf32> to vector<4x8x128xf32>
    %c0_103 = arith.constant 0 : index
    %c0_104 = arith.constant 0 : index
    %c0_105 = arith.constant 0 : index
    %220 = vector.load %arg8[%c0_103, %c0_104, %c0_105] : memref<4x8x128xf32, #tpu.memory_space<vmem>>, vector<4x8x128xf32>
    tpu.vector_store %arg8[%c0_103, %c0_104, %c0_105], %219 {strides = array<i32>} : memref<4x8x128xf32, #tpu.memory_space<vmem>>, vector<4x8x128xf32>,
    return
  }
  func.func @transform_0(%arg0: i32, %arg1: i32) -> (i32, i32) {
    %c0_i32 = arith.constant 0 : i32
    %c0_i32_0 = arith.constant 0 : i32
    return %arg0, %c0_i32 : i32, i32
  }
  func.func @transform_1(%arg0: i32, %arg1: i32) -> (i32, i32, i32) {
    %c0_i32 = arith.constant 0 : i32
    %c0_i32_0 = arith.constant 0 : i32
    %c0_i32_1 = arith.constant 0 : i32
    return %arg1, %c0_i32, %c0_i32_0 : i32, i32, i32
  }
  func.func @transform_2(%arg0: i32, %arg1: i32) -> (i32, i32, i32) {
    %c0_i32 = arith.constant 0 : i32
    %c0_i32_0 = arith.constant 0 : i32
    %c0_i32_1 = arith.constant 0 : i32
    return %arg1, %c0_i32, %c0_i32_0 : i32, i32, i32
  }
  func.func @transform_3(%arg0: i32, %arg1: i32) -> (i32, i32) {
    %c0_i32 = arith.constant 0 : i32
    %c0_i32_0 = arith.constant 0 : i32
    %c0_i32_1 = arith.constant 0 : i32
    return %c0_i32, %c0_i32_0 : i32, i32
  }
  func.func @transform_4(%arg0: i32, %arg1: i32) -> (i32, i32) {
    %c0_i32 = arith.constant 0 : i32
    %c0_i32_0 = arith.constant 0 : i32
    %c0_i32_1 = arith.constant 0 : i32
    return %c0_i32, %c0_i32_0 : i32, i32
  }
  func.func @transform_5(%arg0: i32, %arg1: i32) -> (i32, i32) {
    %c0_i32 = arith.constant 0 : i32
    %c0_i32_0 = arith.constant 0 : i32
    %c0_i32_1 = arith.constant 0 : i32
    return %c0_i32, %c0_i32_0 : i32, i32
  }
  func.func @transform_6(%arg0: i32, %arg1: i32) -> (i32, i32, i32) {
    %c0_i32 = arith.constant 0 : i32
    %c0_i32_0 = arith.constant 0 : i32
    return %arg1, %arg0, %c0_i32 : i32, i32, i32
  }
}

</mosaic_0001>

<bundles_post_ra>
// kernel: tpu_custom_call.1
= control target key start
LH: loop header
LB: loop body
LE: loop exit
PB: predicated region body
PF: predicated region fallthrough
CT: control target
= control target key end

     0   :  { %s3264_s0 = inlined_call_operand.hbm [shape: bf16[8,16], index: 0, kind: input, shape index: {}]   ;;  %s3265_s1 = inlined_call_operand.hbm [shape: bf16[8,16,512], index: 1, kind: input, shape index: {}]   ;;  %s3266_s2 = inlined_call_operand.hbm [shape: f32[8,1,512], index: 2, kind: input, shape index: {}]   ;;  %s3267_s3 = inlined_call_operand.hbm [shape: bf16[128,512], index: 3, kind: input, shape index: {}]   ;;  %s3268_s4 = inlined_call_operand.hbm [shape: bf16[128,128], index: 4, kind: input, shape index: {}]   ;;  %s3269_s5 = inlined_call_operand.vmem [shape: f32[1,128], index: 5, kind: input, shape index: {}]   ;;  %s3270_s6 = inlined_call_operand.hbm [shape: f32[8,8,128], index: 6, kind: output, shape index: {}]  }
   0x1   :  { %3289 = sst [smem:[#allocation26_spill]] %s3265_s1 }
   0x2   :  { %3290 = sst [smem:[#allocation27_spill]] %s3267_s3 }
   0x3   :  { %3291 = sst [smem:[#allocation28_spill]] %s3270_s6 }
   0x4   :  { %11 = vsyncpa [#allocation7], 0 }
   0x5   :  { %12 = vsyncpa [#allocation10], 0 }
   0x6   :  { %14 = vsyncpa [#allocation10 + $0x1], 0 }
   0x7   :  { %15 = vsyncpa [#allocation13], 0 }
   0x8   :  { %16 = vsyncpa [#allocation8], 0 }
   0x9   :  { %18 = vsyncpa [#allocation8 + $0x1], 0  ;;  %s2630_s21 = smov 0   ;;  %s2632_s22 = smov 0  }
   0xa   :  { %s2634_s23 = smov 0   ;;  %s2636_s24 = smov 0  }
   0xb   :  { %s2638_s25 = smov 0   ;;  %s2640_s26 = smov 0  }
   0xc LB: > { %3292 = sst [smem:[#allocation20_spill]] %s2559_s21  ;;  %s2661_s27 = sadd.s32 4294967295, %s2579_s26   ;;  %s2579_s26 = sphi %s2640_s26, %s24_s26   ;;  %s2575_s25 = sphi %s2638_s25, %s3334_s25   ;;  %s2571_s24 = sphi %s2636_s24, %s3333_s24   ;;  %s2567_s23 = sphi %s2634_s23, %s3329_s23   ;;  %s2563_s22 = sphi %s2632_s22, %s3332_s22   ;;  %s2559_s21 = sphi %s2630_s21, %s3331_s21  }
   0xd   : > { %3293 = sst [smem:[#allocation21_spill]] %s2567_s23  ;;  %s1893_s28 = sadd.s32 4294967294, %s2579_s26  }
   0xe   : > { %3294 = sst [smem:[#allocation22_spill]] %s2579_s26  ;;  %p82_p0 = scmp.ne.s32.totalorder %s2563_s22, %s2559_s21 }
   0xf   : > { %p3271_p1 = scmp.eq.s32.totalorder %s2661_s27, 0  ;;  %p203_p3 = scmp.eq.s32.totalorder %s1893_s28, 1 }
  0x10   : > { %p1894_p5 = scmp.ge.s32.totalorder %s2579_s26, 1  ;;  %p210_p7 = scmp.lt.s32.totalorder %s2579_s26, 3 }
  0x11   : > { %p2670_p4 = por %p3271_p1, %p82_p0  ;;  %p2675_p6 = por %p203_p3, %p82_p0 }
  0x12   : > { %p2680_p8 = pnand %p1894_p5, %p210_p7  ;;  %s2581_s8 = smov [#allocation12]  }
  0x13   : > { %s3295_s29 = scalar_select %p2670_p4, 1, 0 }
  0x14   : > { %s3296_s30 = scalar_select %p2675_p6, 1, 0 }
  0x15   : > { %s3298_s7 = scalar_select %p2680_p8, 1, 0 }
  0x16   : > { %3297 = sst [smem:[#allocation23_spill]] %s3296_s30  ;;  %s235_s9 = sshll.u32 %s2581_s8, 4  ;;  %s236_s9 = int_to_ptr.vmem [resolvable:$true] %s235_s9 }
  0x17   : > { %p2097_p9 = pneg %p2680_p8  ;;  %s33_s11 = sadd.s32 1, %s2575_s25 }
  0x18   : > { %s3300_s3 = sld [smem:[#allocation27_spill]] }
  0x19   : > { %p2689_p11 = pnand %p2097_p9, %p3271_p1 }
  0x1b   : > { %s3299_s10 = scalar_select %p2689_p11, 1, 0 }
  0x1c   : > { %p2702_p13 = pneg %p2689_p11 }
  0x1e   : > { %s2345_s14 = scalar_lea.hbm %s3300_s3, 4096 }
  0x1f   : > { %p2346_p12 = scmp.ne.s32.totalorder %s3300_s3, %s2345_s14  ;;  %p2352_p5 = scmp.lt.u32.totalorder %s2345_s14, %s3300_s3 }
  0x21   : > { %p2348_p0 = pnand %p2702_p13, %p2346_p12 }
  0x23   : > { %p2349_p3 = pneg %p2348_p0 }
  0x25   : > { %p2354_p7 = pnand %p2352_p5, %p2349_p3 }
  0x27   : > { %2357 = shalt.err (!%p2354_p7)
}
  0x28   : > { %s2358_s20 = scalar_lea.vmem %s236_s9, 4096  ;;  %p2366_p2 = scmp.lt.s32.totalorder %s236_s9, %s236_s9 }
  0x29   : > { %p2359_p9 = scmp.ne.s32.totalorder %s236_s9, %s2358_s20  ;;  %p2367_p6 = scmp.lt.s32.totalorder %s2358_s20, %s2358_s20 }
  0x2b   : > { %p2361_p10 = pnand %p2359_p9, %p2702_p13  ;;  %p2368_p4 = por %p2367_p6, %p2366_p2 }
  0x2d   : > { %p2362_p1 = pneg %p2361_p10 }
  0x2f   : > { %p2369_p8 = pnand %p2368_p4, %p2362_p1 }
  0x31   : > { %2372 = shalt.err (!%p2369_p8)
}
  0x32   : > { %s3274_s28 = smov 256   ;;  %s3275_s8 = smov 16  }
  0x33   : > { %2103 = dma.hbm_to_vmem [thread:$0]  (!%p2689_p11), %s3300_s3, 4096, %s236_s9, [#allocation13], %s3274_s28, %s3274_s28, %s3275_s8  }
  0x34   : > { %p34_p1 = scmp.ge.s32.totalorder %s33_s11, 2  ;;  %s69_s14 = sadd.s32 1, %s2567_s23 }
  0x35   : > { %p76_p2 = scmp.ne.s32.totalorder %s2567_s23, %s2563_s22  ;;  %p77_p4 = scmp.eq.s32.totalorder %s2579_s26, 0 }
  0x36   : > { %s3336_s11 = smov (%p34_p1, %s33_s11), 0  ;;  %p3304_p8 = scmp.eq.s32.totalorder %s2661_s27, 1 }
  0x37   : > { %3302 = sst [smem:[#allocation24_spill]] %s3336_s11  ;;  %p2727_p6 = por %p77_p4, %p76_p2 }
  0x38   : > { %p2733_p10 = por %p3304_p8, %p76_p2  ;;  %s66_s18 = ssub.s32 %s2575_s25, %s3336_s11 }
  0x39   : > { %p2121_p12 = scmp.lt.s32.totalorder %s2579_s26, 2  ;;  %p67_p0 = scmp.eq.s32.totalorder %s66_s18, 0 }
  0x3a   : > { %s3305_s16 = scalar_select %p2733_p10, 1, 0 }
  0x3b   : > { %s265_s9 = sand.u32 1, %s2579_s26   ;;  %s267_s19 = sand.u32 1, %s2567_s23  }
  0x3c   : > { %s2743_s20 = scalar_select %p67_p0, %s2567_s23, %s69_s14  }
  0x3d   : > { %s1899_s12 = sshll.u32 %s267_s19, 7  ;;  %s2001_s13 = sshll.u32 %s2575_s25, 11 }
  0x3e   : > { %3306 = sst [smem:[#allocation25_spill]] %s2743_s20  ;;  %s3307_s1 = sld [smem:[#allocation26_spill]] }
  0x3f   : > { %s269_s30 = scalar_lea.vmem [#allocation9], %s1899_s12  ;;  %p2753_p3 = pnand %p2121_p12, %p2727_p6 }
  0x40   : > { %s277_s21 = sshll.u32 %s269_s30, 4  ;;  %s2759_s14 = sshll.u32 %s267_s19, 4  ;;  %s2757_s21 = int_to_ptr.vmem [resolvable:$true] %s277_s21 }
  0x41   : > { %s3308_s18 = scalar_select %p2753_p3, 1, 0 }
  0x42   : > { %s2761_s28 = scalar_lea.sflag [#allocation10], %s265_s9  ;;  %p3286_p7 = pneg %p2753_p3 }
  0x44   : > { %s2749_s3 = scalar_lea.hbm %s3307_s1, %s2001_s13  ;;  %s2378_s12 = scalar_lea.hbm %s3307_s1, 4096 }
  0x45   : > { %s2373_s8 = scalar_lea.hbm %s2749_s3, 2048  ;;  %p2379_p2 = scmp.lt.u32.totalorder %s2749_s3, %s3307_s1 }
  0x46   : > { %p2374_p5 = scmp.ne.s32.totalorder %s2749_s3, %s2373_s8  ;;  %p2380_p4 = scmp.lt.u32.totalorder %s2378_s12, %s2373_s8 }
  0x47   : > { %p2382_p8 = scmp.lt.u32.totalorder %s2373_s8, %s2749_s3 }
  0x48   : > { %p2376_p9 = pnand %p3286_p7, %p2374_p5  ;;  %p2381_p6 = por %p2380_p4, %p2379_p2 }
  0x4a   : > { %p2377_p1 = pneg %p2376_p9  ;;  %p2383_p12 = por %p2382_p8, %p2381_p6 }
  0x4c   : > { %p2384_p0 = pnand %p2383_p12, %p2377_p1 }
  0x4e   : > { %2387 = shalt.err (!%p2384_p0)
}
  0x4f   : > { %s2388_s9 = scalar_lea.vmem %s2757_s21, 2048  ;;  %s2584_s19 = smov [#allocation9]  }
  0x50   : > { %p2389_p5 = scmp.ne.s32.totalorder %s2757_s21, %s2388_s9  ;;  %s2393_s30 = sshll.u32 %s2584_s19, 4  ;;  %s2394_s30 = int_to_ptr.vmem [resolvable:$false] %s2393_s30 }
  0x51   : > { %s2395_s11 = scalar_lea.vmem %s2394_s30, 4096  ;;  %p2396_p11 = scmp.lt.s32.totalorder %s2757_s21, %s2394_s30 }
  0x52   : > { %p2391_p9 = pnand %p2389_p5, %p3286_p7  ;;  %p2397_p2 = scmp.lt.s32.totalorder %s2395_s11, %s2388_s9 }
  0x54   : > { %p2392_p10 = pneg %p2391_p9  ;;  %p2398_p4 = por %p2397_p2, %p2396_p11 }
  0x56   : > { %p2399_p6 = pnand %p2398_p4, %p2392_p10 }
  0x58   : > { %2402 = shalt.err (!%p2399_p6)
}
  0x59   : > { %s3309_s8 = smov 16   ;;  %s3310_s15 = smov 256  }
  0x5a   : > { %2110 = dma.hbm_to_vmem [thread:$0]  (!%p2753_p3), %s2749_s3, 2048, %s2757_s21, %s2761_s28, %s3310_s15, %s3310_s15, %s3309_s8  }
  0x5b   : > { %s291_s12 = scalar_lea.vmem [#allocation11], %s2759_s14  ;;  %s2585_s19 = smov [#allocation6]  }
  0x5c   : > { %s2793_s13 = sshll.u32 %s291_s12, 4  ;;  %s225_s30 = sshll.u32 %s2585_s19, 4  ;;  %s226_s30 = int_to_ptr.vmem [resolvable:$true] %s225_s30  ;;  %s2841_s13 = int_to_ptr.vmem [resolvable:$true] %s2793_s13 }
  0x5d   : > { %s2586_s9 = smov [#allocation14]   ;;  %s2403_s23 = scalar_lea.hbm %s3264_s0, 64 }
  0x5e   : > { %s248_s11 = sshll.u32 %s2586_s9, 4  ;;  %p2404_p11 = scmp.ne.s32.totalorder %s3264_s0, %s2403_s23  ;;  %s249_s11 = int_to_ptr.vmem [resolvable:$true] %s248_s11 }
  0x5f   : > { %p2410_p8 = scmp.lt.u32.totalorder %s2403_s23, %s3264_s0 }
  0x60   : > { %p2406_p10 = pnand %p2404_p11, %p2702_p13 }
  0x62   : > { %p2407_p1 = pneg %p2406_p10 }
  0x64   : > { %p2412_p12 = pnand %p2410_p8, %p2407_p1 }
  0x66   : > { %2415 = shalt.err (!%p2412_p12)
}
  0x67   : > { %s2416_s14 = scalar_lea.vmem %s226_s30, 64  ;;  %p2424_p2 = scmp.lt.s32.totalorder %s226_s30, %s226_s30 }
  0x68   : > { %p2417_p0 = scmp.ne.s32.totalorder %s226_s30, %s2416_s14  ;;  %p2425_p4 = scmp.lt.s32.totalorder %s2416_s14, %s2416_s14 }
  0x6a   : > { %p2419_p5 = pnand %p2417_p0, %p2702_p13  ;;  %p2426_p6 = por %p2425_p4, %p2424_p2 }
  0x6c   : > { %p2420_p9 = pneg %p2419_p5 }
  0x6e   : > { %p2427_p7 = pnand %p2426_p6, %p2420_p9 }
  0x70   : > { %2430 = shalt.err (!%p2427_p7)
}
  0x71   : > { %p3311_p11 = scmp.ne.s32.totalorder %s3299_s10, 0  ;;  %s2003_s23 = sshll.u32 %s2575_s25, 8 }
  0x72   : > { %s2431_s8 = scalar_lea.hbm %s3268_s4, 1024 }
  0x73   : > { %2100 = dma.hbm_to_vmem [thread:$0]  (!%p3311_p11), %s3264_s0, 64, %s226_s30, [#allocation7]  }
  0x74   : > { %p2432_p10 = scmp.ne.s32.totalorder %s3268_s4, %s2431_s8  ;;  %p2438_p8 = scmp.lt.u32.totalorder %s2431_s8, %s3268_s4 }
  0x76   : > { %p2434_p7 = pnand %p2432_p10, %p2702_p13 }
  0x78   : > { %p2435_p1 = pneg %p2434_p7 }
  0x7a   : > { %p2440_p12 = pnand %p2438_p8, %p2435_p1 }
  0x7c   : > { %2443 = shalt.err (!%p2440_p12)
}
  0x7d   : > { %s2444_s30 = scalar_lea.vmem %s249_s11, 1024  ;;  %p2452_p2 = scmp.lt.s32.totalorder %s249_s11, %s249_s11 }
  0x7e   : > { %p2445_p0 = scmp.ne.s32.totalorder %s249_s11, %s2444_s30  ;;  %p2453_p4 = scmp.lt.s32.totalorder %s2444_s30, %s2444_s30 }
  0x80   : > { %p2447_p5 = pnand %p2445_p0, %p2702_p13  ;;  %p2454_p6 = por %p2453_p4, %p2452_p2 }
  0x82   : > { %p2448_p9 = pneg %p2447_p5 }
  0x84   : > { %p2455_p3 = pnand %p2454_p6, %p2448_p9 }
  0x86   : > { %2458 = shalt.err (!%p2455_p3)
}
  0x87   : > { %s2587_s3 = smov 64   ;;  %s2588_s21 = smov 4  }
  0x88   : > { %2106 = dma.hbm_to_vmem [thread:$0]  (!%p3311_p11), %s3268_s4, 1024, %s249_s11, [#allocation13], %s2587_s3, %s2587_s3, %s2588_s21  }
  0x89   : > { %s2838_s26 = scalar_lea.hbm %s3266_s2, %s2003_s23  ;;  %p3312_p3 = scmp.ne.s32.totalorder %s3308_s18, 0 }
  0x8a   : > { %s2459_s20 = scalar_lea.hbm %s2838_s26, 256  ;;  %s2464_s11 = scalar_lea.hbm %s3266_s2, 512 }
  0x8b   : > { %p2460_p13 = scmp.ne.s32.totalorder %s2838_s26, %s2459_s20  ;;  %p3313_p10 = pneg %p3312_p3 }
  0x8c   : > { %p2465_p11 = scmp.lt.u32.totalorder %s2838_s26, %s3266_s2  ;;  %p2466_p8 = scmp.lt.u32.totalorder %s2464_s11, %s2459_s20 }
  0x8d   : > { %p2462_p7 = pnand %p2460_p13, %p3313_p10  ;;  %p2468_p0 = scmp.lt.u32.totalorder %s2459_s20, %s2838_s26 }
  0x8e   : > { %p2467_p12 = por %p2466_p8, %p2465_p11 }
  0x8f   : > { %p2463_p1 = pneg %p2462_p7 }
  0x90   : > { %p2469_p5 = por %p2468_p0, %p2467_p12 }
  0x92   : > { %p2470_p9 = pnand %p2469_p5, %p2463_p1 }
  0x94   : > { %2473 = shalt.err (!%p2470_p9)
}
  0x95   : > { %s2474_s23 = scalar_lea.vmem %s2841_s13, 256  ;;  %p3314_p4 = pmov %p3313_p10 }
  0x96   : > { %p2475_p2 = scmp.ne.s32.totalorder %s2841_s13, %s2474_s23  ;;  %s2589_s19 = smov [#allocation11]  }
  0x97   : > { %s2479_s9 = sshll.u32 %s2589_s19, 4  ;;  %s2480_s9 = int_to_ptr.vmem [resolvable:$false] %s2479_s9 }
  0x98   : > { %p2477_p6 = pnand %p2475_p2, %p3314_p4  ;;  %s2481_s30 = scalar_lea.vmem %s2480_s9, 512 }
  0x99   : > { %p2482_p10 = scmp.lt.s32.totalorder %s2841_s13, %s2480_s9  ;;  %p2483_p7 = scmp.lt.s32.totalorder %s2481_s30, %s2474_s23 }
  0x9a   : > { %p2478_p13 = pneg %p2477_p6 }
  0x9b   : > { %p2484_p11 = por %p2483_p7, %p2482_p10 }
  0x9d   : > { %p2485_p8 = pnand %p2484_p11, %p2478_p13 }
  0x9f   : > { %2488 = shalt.err (!%p2485_p8)
}
  0xa0   : > { %2113 = dma.hbm_to_vmem [thread:$0]  (!%p3312_p3), %s2838_s26, 256, %s2841_s13, %s2761_s28, %s2587_s3, %s2587_s3, %s2588_s21  }
  0xa1   : > { %p3315_p1 = scmp.ne.s32.totalorder %s3298_s7, 0 }
  0xa2   : > { %p3316_p12 = scmp.eq.s32.totalorder (!%p3315_p1), %s2661_s27, 0 }
  0xa3   : > { %311 = sbr.rel (%p3315_p1) target bundleno = 1849 (0x739), region = 44 }
  0xaa   : > { %2542 = dma.done.wait (%p3316_p12), [#allocation7], 64   ;;  %p3317_p0 = pmov %p3316_p12 }
  0xab   : > { %s317_s18 = sand.u32 1, %s2661_s27   ;;  %s2878_s14 = sand.u32 1, %s2563_s22  }
  0xac   : > { %2544 = vsyncadd (%p3317_p0), [#allocation7], 4294967232  ;;  %s1909_s1 = sshll.u32 %s2878_s14, 7  ;;  %s318_s17 = scalar_lea.sflag [#allocation10], %s317_s18 }
  0xad   : > { %s2881_s6 = scalar_lea.vmem [#allocation9], %s1909_s1  ;;  %p3318_p3 = scmp.ne.s32.totalorder %s3295_s29, 0 }
  0xaf   : > { %2546 = dma.done.wait (%p3318_p3), %s318_s17, 2304  }
  0xb0   : > { %2548 = vsyncadd (%p3318_p3), %s318_s17, 4294964992  ;;  %s1910_s7 = sshll.u32 %s2878_s14, 4  ;;  %p3319_p5 = pmov %p3317_p0 }
  0xb1   : > { %s2888_s28 = scalar_lea.vmem [#allocation11], %s1910_s7 }
  0xb2   : > { %2550 = dma.done.wait (%p3319_p5), [#allocation13], 5120   ;;  %p3320_p9 = pmov %p3317_p0 }
  0xb3   : > { %s1913_s13 = sshll.u32 %s2878_s14, 5  ;;  %p1914_p2 = scmp.ne.s32.totalorder %s2571_s24, 0 }
  0xb4   : > { %2552 = vsyncadd (%p3320_p9), [#allocation13], 4294962176  ;;  %s2895_s3 = scalar_lea.vmem [#allocation15], %s1913_s13  ;;  %v2590_v0 = vmov (!%p1914_p2), 0.0  }
  0xb5   : > { %379 = sbr.rel (%p1914_p2) target bundleno = 188 (0xbc), region = 68  ;;  %380 = vst [vmem:[#allocation2] sm:$0xff] (!%p1914_p2), %v2590_v0  ;;  %381 = vst [vmem:[#allocation3] sm:$0xff] (!%p1914_p2), %v2590_v0 }
  0xbc PF: > { %v2185_v1 = vld [vmem:[%s2881_s6 + $0x4] ss:$16 sps:$4 sm:$0xff]   ;;  %v2591_v3 = vmov 0   ;;  %v2189_v4 = vld [vmem:[%s2881_s6] ss:$16 sps:$4 sm:$0xff]   ;;  %vm461_vm0 = vcmask 130048   ;;  %v421_v61 = vlaneseq }
  0xbd   : > { %v2187_v2 = vld [vmem:[%s2881_s6 + $0x44] ss:$16 sps:$4 sm:$0xff]   ;;  %497 = vmatprep.mubr.bf16.mxu1 %v2591_v3  ;;  %766 = vmatprep.mubr.bf16.mxu0 %v2591_v3  ;;  %v2190_v5 = vld [vmem:[%s2881_s6 + $0x40] ss:$16 sps:$4 sm:$0xff]   ;;  %v2904_v6 = vld [vmem:[#allocation6] sm:$0xf] }
  0xbe   : > { %465 = vmatprep.subr.bf16.mxu1 %v2185_v1  ;;  %734 = vmatprep.subr.bf16.mxu0 %v2187_v2  ;;  %v2191_v7 = vld [vmem:[%s2881_s6 + $0x8] ss:$16 sps:$4 sm:$0xff]   ;;  %v2193_v8 = vld [vmem:[%s2881_s6 + $0xc] ss:$16 sps:$4 sm:$0xff]   ;;  %v2194_v9 = vld [vmem:[%s2881_s6 + $0x60] ss:$16 sps:$4 sm:$0xff]  }
  0xbf   : > { %466 = vmatpush1.bf16.msra.mxu1 %v2189_v4  ;;  %735 = vmatpush1.bf16.msra.mxu0 %v2190_v5  ;;  %v2196_v10 = vld [vmem:[%s2881_s6 + $0x64] ss:$16 sps:$4 sm:$0xff]   ;;  %v2199_v13 = vld [vmem:[%s2881_s6 + $0x20] ss:$16 sps:$4 sm:$0xff]   ;;  %v2210_v16 = vld [vmem:[%s2881_s6 + $0x2c] ss:$16 sps:$4 sm:$0xff]  }
  0xc0   : > { %506 = vmatprep.subr.bf16.mxu1 %v2193_v8  ;;  %v2910_v11 = vld [vmem:[#allocation12 + $0x4] ss:$16 sps:$4 sm:$0xff]   ;;  %869 = vmatprep.subr.bf16.mxu0 %v2196_v10  ;;  %v2921_v14 = vld [vmem:[#allocation12] ss:$16 sps:$4 sm:$0xff]   ;;  %v2208_v19 = vld [vmem:[%s2881_s6 + $0x28] ss:$16 sps:$4 sm:$0xff]  }
  0xc1   : > { %v2201_v12 = vld [vmem:[%s2881_s6 + $0x24] ss:$16 sps:$4 sm:$0xff]   ;;  %v2931_v17 = vld [vmem:[#allocation12 + $0x20] ss:$16 sps:$4 sm:$0xff]   ;;  %v2219_v22 = vld [vmem:[%s2881_s6 + $0x4c] ss:$16 sps:$4 sm:$0xff]  }
  0xc2   : > { %1919 = vmatmul.mubr.msk.bf16.vlgmr.msra.gmra.mrb[0].mxu1 %vm461_vm0, %v2904_v6  ;;  %1941 = vmatmul.mubr.msk.bf16.vlgmr.msra.gmra.mrb[0].mxu0 %vm461_vm0, %v2904_v6  ;;  %v2923_v15 = vld [vmem:[#allocation12 + $0x24] ss:$16 sps:$4 sm:$0xff]   ;;  %v2940_v20 = vld [vmem:[#allocation12 + $0x40] ss:$16 sps:$4 sm:$0xff]   ;;  %v2217_v25 = vld [vmem:[%s2881_s6 + $0x48] ss:$16 sps:$4 sm:$0xff]  }
  0xc3   : > { %507 = vmatpush1.bf16.msra.mxu1 %v2191_v7  ;;  %870 = vmatpush1.bf16.msra.mxu0 %v2194_v9  ;;  %v2935_v18 = vld [vmem:[#allocation12 + $0x44] ss:$16 sps:$4 sm:$0xff]   ;;  %v2949_v23 = vld [vmem:[#allocation12 + $0x60] ss:$16 sps:$4 sm:$0xff]   ;;  %v2228_v28 = vld [vmem:[%s2881_s6 + $0x6c] ss:$16 sps:$4 sm:$0xff]  }
  0xc4   : > { %538 = vmatprep.mubr.bf16.mxu1 %v2591_v3  ;;  %901 = vmatprep.mubr.bf16.mxu0 %v2591_v3  ;;  %v2943_v21 = vld [vmem:[#allocation12 + $0x64] ss:$16 sps:$4 sm:$0xff]   ;;  %v2957_v26 = vld [vmem:[#allocation12 + $0x80] ss:$16 sps:$4 sm:$0xff]   ;;  %v2226_v31 = vld [vmem:[%s2881_s6 + $0x68] ss:$16 sps:$4 sm:$0xff]  }
  0xc5   : > { %1123 = vmatprep.subr.bf16.mxu0 %v2910_v11  ;;  %599 = vmatprep.subr.bf16.mxu1 %v2201_v12  ;;  %v2953_v24 = vld [vmem:[#allocation12 + $0x84] ss:$16 sps:$4 sm:$0xff]   ;;  %v2966_v29 = vld [vmem:[#allocation12 + $0xa0] ss:$16 sps:$4 sm:$0xff]   ;;  %v2979_v34 = vld [vmem:[#allocation12 + $0xc] ss:$16 sps:$4 sm:$0xff]  }
  0xc6   : > { %v2960_v27 = vld [vmem:[#allocation12 + $0xa4] ss:$16 sps:$4 sm:$0xff]   ;;  %v2973_v32 = vld [vmem:[#allocation12 + $0xc0] ss:$16 sps:$4 sm:$0xff]   ;;  %v2990_v38 = vld [vmem:[#allocation12 + $0x8] ss:$16 sps:$4 sm:$0xff]  }
  0xc7   : > { %v2968_v30 = vld [vmem:[#allocation12 + $0xc4] ss:$16 sps:$4 sm:$0xff]   ;;  %v2984_v35 = vld [vmem:[#allocation12 + $0xe0] ss:$16 sps:$4 sm:$0xff]   ;;  %v2992_v39 = vld [vmem:[#allocation12 + $0x2c] ss:$16 sps:$4 sm:$0xff]  }
  0xc8   : > { %v2975_v33 = vld [vmem:[#allocation12 + $0xe4] ss:$16 sps:$4 sm:$0xff]   ;;  %v956_v36 = vld [vmem:[#allocation2] sm:$0xff]  ;;  %v2998_v40 = vld [vmem:[#allocation12 + $0x28] ss:$16 sps:$4 sm:$0xff]   ;;  %v422_v62 = vshrl.u32 %v421_v61, 7 }
  0xc9   : > { %v962_v37 = vpack.c.bf16 %v956_v36, %v956_v36  ;;  %v3002_v41 = vld [vmem:[#allocation12 + $0x4c] ss:$16 sps:$4 sm:$0xff]   ;;  %v3008_v42 = vld [vmem:[#allocation12 + $0x48] ss:$16 sps:$4 sm:$0xff]   ;;  %v419_v0 = vld [vmem:[%s2888_s28] sm:$0xf] }
  0xca   : > { %1920 = vmatmul.mubr.msk.bf16.vlgmr.msra.gmra.mrb[4].mxu1 %vm461_vm0, %v2904_v6  ;;  %1952 = vmatmul.mubr.msk.bf16.vlgmr.msra.gmra.mrb[4].mxu0 %vm461_vm0, %v2904_v6  ;;  %v3011_v43 = vld [vmem:[#allocation12 + $0x6c] ss:$16 sps:$4 sm:$0xff]   ;;  %v3016_v44 = vld [vmem:[#allocation12 + $0x68] ss:$16 sps:$4 sm:$0xff]   ;;  %v3078_v63 = vsub.s32 0, %v422_v62  ;;  %v3081_v1 = vsub.s32 1, %v422_v62 }
  0xcb   : > { %1124 = vmatpush1.bf16.msra.mxu0 %v2921_v14  ;;  %600 = vmatpush1.bf16.msra.mxu1 %v2199_v13  ;;  %v3019_v45 = vld [vmem:[#allocation12 + $0x8c] ss:$16 sps:$4 sm:$0xff]   ;;  %v3024_v46 = vld [vmem:[#allocation12 + $0x88] ss:$16 sps:$4 sm:$0xff]   ;;  %v3087_v36 = vsub.s32 3, %v422_v62  ;;  %s2004_s21 = sshll.u32 %s2571_s24, 9 }
  0xcc   : > { %1125 = vmatprep.subr.bf16.mxu0 %v2923_v15  ;;  %631 = vmatprep.mubr.bf16.mxu1 %v2591_v3  ;;  %v3027_v47 = vld [vmem:[#allocation12 + $0xac] ss:$16 sps:$4 sm:$0xff]   ;;  %v3032_v48 = vld [vmem:[#allocation12 + $0xa8] ss:$16 sps:$4 sm:$0xff]   ;;  %v424_v2 = vrot.slane %v419_v0, %v3078_v63  ;;  %v428_v4 = vrot.slane %v419_v0, %v3081_v1  ;;  %s1756_s26 = sshll.u32 %s2895_s3, 4  ;;  %s3321_s8 = sld [smem:[#allocation28_spill]]  ;;  %s3214_s26 = int_to_ptr.vmem [resolvable:$true] %s1756_s26 }
  0xcd   : > { %640 = vmatprep.subr.bf16.mxu1 %v2210_v16  ;;  %1155 = vmatprep.mubr.bf16.mxu0 %v2591_v3  ;;  %v3035_v49 = vld [vmem:[#allocation12 + $0xcc] ss:$16 sps:$4 sm:$0xff]   ;;  %v3040_v50 = vld [vmem:[#allocation12 + $0xc8] ss:$16 sps:$4 sm:$0xff]   ;;  %s1742_s15 = scalar_lea.sflag [#allocation8], %s2878_s14  ;;  %s2489_s12 = scalar_lea.vmem %s3214_s26, 512 }
  0xce   : > { %v3043_v51 = vld [vmem:[#allocation12 + $0xec] ss:$16 sps:$4 sm:$0xff]   ;;  %v3048_v52 = vld [vmem:[#allocation12 + $0xe8] ss:$16 sps:$4 sm:$0xff]   ;;  %p2490_p4 = scmp.ne.s32.totalorder %s3214_s26, %s2489_s12  ;;  %p3322_p6 = scmp.ne.s32.totalorder %s3305_s16, 0 }
  0xcf   : > { %1126 = vmatpush1.bf16.msra.mxu0 %v2931_v17  ;;  %s2592_s24 = smov [#allocation15]  }
  0xd0   : > { %1127 = vmatprep.subr.bf16.mxu0 %v2935_v18  ;;  %p2491_p13 = pnand %p2490_p4, %p3322_p6  ;;  %s2493_s23 = sshll.u32 %s2592_s24, 4  ;;  %s2494_s23 = int_to_ptr.vmem [resolvable:$false] %s2493_s23 }
  0xd1   : > { %s2495_s19 = scalar_lea.vmem %s2494_s23, 1024  ;;  %p2496_p7 = scmp.lt.s32.totalorder %s3214_s26, %s2494_s23 }
  0xd2   : > { %1930 = vmatmul.mubr.msk.bf16.vlgmr.msra.gmra.mrb[8].mxu1 %vm461_vm0, %v2904_v6  ;;  %s3212_s11 = scalar_lea.hbm %s3321_s8, %s2004_s21  ;;  %p2492_p10 = pneg %p2491_p13 }
  0xd3   : > { %1128 = vmatpush1.bf16.msra.mxu0 %v2940_v20  ;;  %641 = vmatpush1.bf16.msra.mxu1 %v2208_v19  ;;  %p2497_p11 = scmp.lt.s32.totalorder %s2495_s19, %s2489_s12 }
  0xd4   : > { %1129 = vmatprep.subr.bf16.mxu0 %v2943_v21  ;;  %672 = vmatprep.mubr.bf16.mxu1 %v2591_v3 }
  0xd5   : > { %775 = vmatprep.subr.bf16.mxu1 %v2219_v22  ;;  %p2498_p8 = por %p2497_p11, %p2496_p7 }
  0xd7   : > { %1130 = vmatpush1.bf16.msra.mxu0 %v2949_v23  ;;  %p2499_p1 = pnand %p2498_p8, %p2492_p10 }
  0xd8   : > { %1131 = vmatprep.subr.bf16.mxu0 %v2953_v24 }
  0xda   : > { %1931 = vmatmul.mubr.msk.bf16.vlgmr.msra.gmra.mrb[12].mxu1 %vm461_vm0, %v2904_v6 }
  0xdb   : > { %1132 = vmatpush1.bf16.msra.mxu0 %v2957_v26  ;;  %776 = vmatpush1.bf16.msra.mxu1 %v2217_v25 }
  0xdc   : > { %1133 = vmatprep.subr.bf16.mxu0 %v2960_v27  ;;  %807 = vmatprep.mubr.bf16.mxu1 %v2591_v3 }
  0xdd   : > { %910 = vmatprep.subr.bf16.mxu1 %v2228_v28  ;;  %v3085_v28 = vsub.s32 2, %v422_v62 }
  0xdf   : > { %1134 = vmatpush1.bf16.msra.mxu0 %v2966_v29 }
  0xe0   : > { %1135 = vmatprep.subr.bf16.mxu0 %v2968_v30 }
  0xe2   : > { %1942 = vmatmul.mubr.msk.bf16.vlgmr.msra.gmra.mrb[16].mxu1 %vm461_vm0, %v2904_v6 }
  0xe3   : > { %1136 = vmatpush1.bf16.msra.mxu0 %v2973_v32  ;;  %911 = vmatpush1.bf16.msra.mxu1 %v2226_v31 }
  0xe4   : > { %1137 = vmatprep.subr.bf16.mxu0 %v2975_v33  ;;  %942 = vmatprep.mubr.bf16.mxu1 %v2591_v3 }
  0xe5   : > { %1164 = vmatprep.subr.bf16.mxu1 %v2979_v34 }
  0xe7   : > { %1138 = vmatpush1.bf16.msra.mxu0 %v2984_v35 }
  0xe8   : > { %1236 = vmatprep.subr.bf16.mxu0 %v2910_v11 }
  0xea   : > { %1156 = vmatmul.mubr.bf16.vlgmr.msra.gmra.mrb[8].mxu0 %v962_v37  ;;  %1953 = vmatmul.mubr.msk.bf16.vlgmr.msra.gmra.mrb[20].mxu1 %vm461_vm0, %v2904_v6 }
  0xeb   : > { %1165 = vmatpush1.bf16.msra.mxu1 %v2990_v38  ;;  %1196 = vmatprep.mubr.bf16.mxu1 %v2591_v3 }
  0xec   : > { %1166 = vmatprep.subr.bf16.mxu1 %v2992_v39  ;;  %1237 = vmatpush1.bf16.msra.mxu0 %v2921_v14 }
  0xed   : > { %1238 = vmatprep.subr.bf16.mxu0 %v2923_v15  ;;  %1268 = vmatprep.mubr.bf16.mxu0 %v2591_v3 }
  0xef   : > { %1167 = vmatpush1.bf16.msra.mxu1 %v2998_v40 }
  0xf0   : > { %1168 = vmatprep.subr.bf16.mxu1 %v3002_v41  ;;  %1239 = vmatpush1.bf16.msra.mxu0 %v2931_v17 }
  0xf1   : > { %1240 = vmatprep.subr.bf16.mxu0 %v2935_v18 }
  0xf3   : > { %1169 = vmatpush1.bf16.msra.mxu1 %v3008_v42 }
  0xf4   : > { %1170 = vmatprep.subr.bf16.mxu1 %v3011_v43  ;;  %1241 = vmatpush1.bf16.msra.mxu0 %v2940_v20 }
  0xf5   : > { %1242 = vmatprep.subr.bf16.mxu0 %v2943_v21 }
  0xf7   : > { %1171 = vmatpush1.bf16.msra.mxu1 %v3016_v44 }
  0xf8   : > { %1172 = vmatprep.subr.bf16.mxu1 %v3019_v45  ;;  %1243 = vmatpush1.bf16.msra.mxu0 %v2949_v23 }
  0xf9   : > { %1244 = vmatprep.subr.bf16.mxu0 %v2953_v24 }
  0xfb   : > { %1173 = vmatpush1.bf16.msra.mxu1 %v3024_v46 }
  0xfc   : > { %1174 = vmatprep.subr.bf16.mxu1 %v3027_v47  ;;  %1245 = vmatpush1.bf16.msra.mxu0 %v2957_v26 }
  0xfd   : > { %1246 = vmatprep.subr.bf16.mxu0 %v2960_v27 }
  0xff   : > { %1175 = vmatpush1.bf16.msra.mxu1 %v3032_v48 }
 0x100   : > { %1176 = vmatprep.subr.bf16.mxu1 %v3035_v49  ;;  %1247 = vmatpush1.bf16.msra.mxu0 %v2966_v29 }
 0x101   : > { %1248 = vmatprep.subr.bf16.mxu0 %v2968_v30 }
 0x103   : > { %1177 = vmatpush1.bf16.msra.mxu1 %v3040_v50 }
 0x104   : > { %1178 = vmatprep.subr.bf16.mxu1 %v3043_v51  ;;  %1249 = vmatpush1.bf16.msra.mxu0 %v2973_v32 }
 0x105   : > { %1250 = vmatprep.subr.bf16.mxu0 %v2975_v33 }
 0x107   : > { %1179 = vmatpush1.bf16.msra.mxu1 %v3048_v52 }
 0x108   : > { %1277 = vmatprep.subr.bf16.mxu1 %v2979_v34  ;;  %1251 = vmatpush1.bf16.msra.mxu0 %v2984_v35 }
 0x109   : > { %1350 = vmatprep.subr.bf16.mxu0 %v2910_v11 }
 0x10a   : > { %1197 = vmatmul.mubr.bf16.vlgmr.msra.gmra.mrb[4].mxu1 %v962_v37 }
 0x10b   : > { %1278 = vmatpush1.bf16.msra.mxu1 %v2990_v38  ;;  %1309 = vmatprep.mubr.bf16.mxu1 %v2591_v3 }
 0x10c   : > { %1279 = vmatprep.subr.bf16.mxu1 %v2992_v39 }
 0x10f   : > { %1280 = vmatpush1.bf16.msra.mxu1 %v2998_v40 }
 0x110   : > { %1281 = vmatprep.subr.bf16.mxu1 %v3002_v41 }
 0x113   : > { %1282 = vmatpush1.bf16.msra.mxu1 %v3008_v42 }
 0x114   : > { %1283 = vmatprep.subr.bf16.mxu1 %v3011_v43 }
 0x117   : > { %1284 = vmatpush1.bf16.msra.mxu1 %v3016_v44 }
 0x118   : > { %1285 = vmatprep.subr.bf16.mxu1 %v3019_v45 }
 0x11b   : > { %1286 = vmatpush1.bf16.msra.mxu1 %v3024_v46 }
 0x11c   : > { %1287 = vmatprep.subr.bf16.mxu1 %v3027_v47 }
 0x11f   : > { %1288 = vmatpush1.bf16.msra.mxu1 %v3032_v48 }
 0x120   : > { %1289 = vmatprep.subr.bf16.mxu1 %v3035_v49 }
 0x123   : > { %1290 = vmatpush1.bf16.msra.mxu1 %v3040_v50 }
 0x124   : > { %1291 = vmatprep.subr.bf16.mxu1 %v3043_v51 }
 0x127   : > { %1292 = vmatpush1.bf16.msra.mxu1 %v3048_v52 }
 0x128   : > { %1391 = vmatprep.subr.bf16.mxu1 %v2979_v34 }
 0x195   : > { %v499_v53 = vpop.f32.mrb[0].mxu1 }
 0x196   : > { %v501_v54 = vpop.f32.mrb[1].mxu1  ;;  %v500_v5 = vadd.f32 %v499_v53, %v424_v2 }
 0x197   : > { %v503_v55 = vpop.f32.mrb[2].mxu1  ;;  %v502_v6 = vadd.f32 %v501_v54, %v428_v4  ;;  %v432_v54 = vrot.slane %v419_v0, %v3085_v28 }
 0x198   : > { %v504_v56 = vpop.f32.mrb[3].mxu1 }
 0x199   : > { %v436_v56 = vrot.slane %v419_v0, %v3087_v36 }
 0x1a5   : > { %v3074_v57 = vpop.f32.mrb[8].mxu1 }
 0x1a6   : > { %v3076_v58 = vpop.f32.mrb[9].mxu1 }
 0x1a7   : > { %v637_v59 = vpop.f32.mrb[10].mxu1 }
 0x1a8   : > { %v638_v60 = vpop.f32.mrb[11].mxu1 }
 0x1bd   : > { %v1157_v7 = vpop.f32.mrb[8].mxu0 }
 0x1be   : > { %v1205_v8 = vadd.f32 %v1157_v7, %v500_v5  ;;  %v1159_v9 = vpop.f32.mrb[9].mxu0 }
 0x1bf   : > { %v1206_v10 = vadd.f32 %v1159_v9, %v502_v6  ;;  %v1161_v12 = vpop.f32.mrb[10].mxu0 }
 0x1c0   : > { %v1162_v13 = vpop.f32.mrb[11].mxu0  ;;  %v1209_v19 = vsub.f32 0.0, %v1205_v8  ;;  %v957_v8 = vld [vmem:[#allocation3] sm:$0xff] }
 0x1c1   : > { %v1214_v16 = vsub.f32 0.0, %v1206_v10 }
 0x1c2   : > { %v1210_v25 = vmul.f32 1.442695, %v1209_v19 }
 0x1c3   : > { %v1215_v22 = vmul.f32 1.442695, %v1214_v16 }
 0x1c5   : > { %2265 = vpow2.f32 %v1215_v22 }
 0x1c6   : > { %2267 = vpow2.f32 %v1210_v25 }
 0x1cf   : > { %v2266_v31 = vpop.eup %2265 }
 0x1d0   : > { %v2268_v37 = vpop.eup %2267  ;;  %v1217_v53 = vadd.f32 1.0, %v2266_v31 }
 0x1d1   : > { %v1212_v55 = vadd.f32 1.0, %v2268_v37 }
 0x1d2   : > { %2269 = vrcp.f32 %v1217_v53  ;;  %v1925_v53 = vld [vmem:[%s2888_s28 + $0x4] sm:$0xf] }
 0x1d3   : > { %2271 = vrcp.f32 %v1212_v55  ;;  %v566_v55 = vrot.slane %v1925_v53, %v3081_v1 }
 0x1dc   : > { %v2270_v62 = vpop.eup %2269 }
 0x1dd   : > { %v1198_v59 = vpop.f32.mrb[4].mxu1  ;;  %v2272_v9 = vpop.eup %2271  ;;  %v1225_v12 = vmul.f32 %v2270_v62, %v957_v8 }
 0x1de   : > { %v2039_v60 = vadd.f32 %v1198_v59, %v432_v54  ;;  %v1200_v61 = vpop.f32.mrb[5].mxu1  ;;  %v562_v54 = vrot.slane %v1925_v53, %v3078_v63  ;;  %v636_v59 = vadd.f32 %v3076_v58, %v566_v55  ;;  %v570_v58 = vrot.slane %v1925_v53, %v3085_v28 }
 0x1df   : > { %v2040_v2 = vadd.f32 %v1200_v61, %v436_v56  ;;  %v1202_v4 = vpop.f32.mrb[6].mxu1 }
 0x1e0   : > { %2273 = vtanh.f32 %v2039_v60  ;;  %v1203_v5 = vpop.f32.mrb[7].mxu1  ;;  %v634_v56 = vadd.f32 %v3074_v57, %v562_v54 }
 0x1e1   : > { %v1220_v6 = vsub.f32 0.0, %v2040_v2 }
 0x1e3   : > { %v1221_v7 = vmul.f32 1.442695, %v1220_v6 }
 0x1e5   : > { %2275 = vpow2.f32 %v1221_v7  ;;  %v574_v7 = vrot.slane %v1925_v53, %v3087_v36 }
 0x1ea   : > { %v2274_v10 = vpop.eup %2273 }
 0x1eb   : > { %v1226_v13 = vmul.f32 %v2274_v10, %v2272_v9 }
 0x1ed   : > { %v3091_v16 = vadd.f32 %v1226_v13, %v1225_v12 }
 0x1ef   : > { %v2276_v0 = vpop.eup %2275  ;;  %2277 = vtanh.f32 %v3091_v16 }
 0x1f0   : > { %v1223_v19 = vadd.f32 1.0, %v2276_v0 }
 0x1f2   : > { %2279 = vrcp.f32 %v1223_v19 }
 0x1f9   : > { %v2278_v22 = vpop.eup %2277 }
 0x1fc   : > { %v2280_v25 = vpop.eup %2279 }
 0x1fd   : > { %v3094_v31 = vmul.f32 %v2280_v25, %v2278_v22 }
 0x1ff   : > { %v1235_v37 = vpack.c.bf16 %v3094_v31, %v3094_v31 }
 0x201   : > { %1269 = vmatmul.mubr.bf16.vlgmr.msra.gmra.mrb[12].mxu0 %v1235_v37  ;;  %1310 = vmatmul.mubr.bf16.vlgmr.msra.gmra.mrb[12].mxu1 %v1235_v37 }
 0x202   : > { %1351 = vmatpush1.bf16.msra.mxu0 %v2921_v14  ;;  %1392 = vmatpush1.bf16.msra.mxu1 %v2990_v38 }
 0x203   : > { %1352 = vmatprep.subr.bf16.mxu0 %v2923_v15  ;;  %1393 = vmatprep.subr.bf16.mxu1 %v2992_v39 }
 0x204   : > { %1382 = vmatprep.mubr.bf16.mxu0 %v2591_v3  ;;  %1423 = vmatprep.mubr.bf16.mxu1 %v2591_v3 }
 0x206   : > { %1353 = vmatpush1.bf16.msra.mxu0 %v2931_v17  ;;  %1394 = vmatpush1.bf16.msra.mxu1 %v2998_v40 }
 0x207   : > { %1354 = vmatprep.subr.bf16.mxu0 %v2935_v18  ;;  %1395 = vmatprep.subr.bf16.mxu1 %v3002_v41 }
 0x20a   : > { %1355 = vmatpush1.bf16.msra.mxu0 %v2940_v20  ;;  %1396 = vmatpush1.bf16.msra.mxu1 %v3008_v42 }
 0x20b   : > { %1356 = vmatprep.subr.bf16.mxu0 %v2943_v21  ;;  %1397 = vmatprep.subr.bf16.mxu1 %v3011_v43 }
 0x20e   : > { %1357 = vmatpush1.bf16.msra.mxu0 %v2949_v23  ;;  %1398 = vmatpush1.bf16.msra.mxu1 %v3016_v44 }
 0x20f   : > { %1358 = vmatprep.subr.bf16.mxu0 %v2953_v24  ;;  %1399 = vmatprep.subr.bf16.mxu1 %v3019_v45 }
 0x212   : > { %1359 = vmatpush1.bf16.msra.mxu0 %v2957_v26  ;;  %1400 = vmatpush1.bf16.msra.mxu1 %v3024_v46 }
 0x213   : > { %1360 = vmatprep.subr.bf16.mxu0 %v2960_v27  ;;  %1401 = vmatprep.subr.bf16.mxu1 %v3027_v47 }
 0x216   : > { %1361 = vmatpush1.bf16.msra.mxu0 %v2966_v29  ;;  %1402 = vmatpush1.bf16.msra.mxu1 %v3032_v48 }
 0x217   : > { %1362 = vmatprep.subr.bf16.mxu0 %v2968_v30  ;;  %1403 = vmatprep.subr.bf16.mxu1 %v3035_v49 }
 0x21a   : > { %1363 = vmatpush1.bf16.msra.mxu0 %v2973_v32  ;;  %1404 = vmatpush1.bf16.msra.mxu1 %v3040_v50 }
 0x21b   : > { %1364 = vmatprep.subr.bf16.mxu0 %v2975_v33  ;;  %1405 = vmatprep.subr.bf16.mxu1 %v3043_v51 }
 0x21e   : > { %1365 = vmatpush1.bf16.msra.mxu0 %v2984_v35  ;;  %1406 = vmatpush1.bf16.msra.mxu1 %v3048_v52 }
 0x21f   : > { %1464 = vmatprep.subr.bf16.mxu0 %v2910_v11  ;;  %1505 = vmatprep.subr.bf16.mxu1 %v2979_v34 }
 0x2d4   : > { %v1270_v60 = vpop.f32.mrb[12].mxu0  ;;  %v1311_v61 = vpop.f32.mrb[12].mxu1 }
 0x2d5   : > { %v1318_v2 = vadd.f32 %v1270_v60, %v634_v56  ;;  %v1272_v4 = vpop.f32.mrb[13].mxu0  ;;  %v1313_v5 = vpop.f32.mrb[13].mxu1  ;;  %v2045_v22 = vadd.f32 %v1311_v61, %v570_v58  ;;  %v2257_v58 = vld [vmem:[#allocation14] sm:$0xff]  }
 0x2d6   : > { %v1319_v6 = vadd.f32 %v1272_v4, %v636_v59  ;;  %v1274_v11 = vpop.f32.mrb[14].mxu0  ;;  %v1315_v62 = vpop.f32.mrb[14].mxu1  ;;  %v2046_v0 = vadd.f32 %v1313_v5, %v574_v7 }
 0x2d7   : > { %v1322_v34 = vsub.f32 0.0, %v1318_v2  ;;  %v1275_v8 = vpop.f32.mrb[15].mxu0  ;;  %v1316_v9 = vpop.f32.mrb[15].mxu1 }
 0x2d8   : > { %v1327_v10 = vsub.f32 0.0, %v1319_v6  ;;  %v1333_v57 = vsub.f32 0.0, %v2046_v0 }
 0x2d9   : > { %v1323_v12 = vmul.f32 1.442695, %v1322_v34 }
 0x2da   : > { %v1328_v13 = vmul.f32 1.442695, %v1327_v10  ;;  %v1334_v19 = vmul.f32 1.442695, %v1333_v57 }
 0x2db   : > { %2281 = vpow2.f32 %v1323_v12 }
 0x2dc   : > { %2283 = vpow2.f32 %v1328_v13 }
 0x2dd   : > { %2285 = vpow2.f32 %v1334_v19  ;;  %v2258_v19 = vld [vmem:[#allocation14 + $0x8] sm:$0xff]  }
 0x2de   : > { %2287 = vtanh.f32 %v2045_v22  ;;  %v2259_v22 = vld [vmem:[#allocation14 + $0x10] sm:$0xff]  }
 0x2e5   : > { %v2282_v25 = vpop.eup %2281 }
 0x2e6   : > { %v2284_v37 = vpop.eup %2283  ;;  %v1325_v54 = vadd.f32 1.0, %v2282_v25  ;;  %v2260_v25 = vld [vmem:[#allocation14 + $0x18] sm:$0xff]  }
 0x2e7   : > { %v1330_v55 = vadd.f32 1.0, %v2284_v37  ;;  %v2286_v56 = vpop.eup %2285  ;;  %v2261_v37 = vld [vmem:[#allocation14 + $0x20] sm:$0xff]  }
 0x2e8   : > { %2289 = vrcp.f32 %v1325_v54  ;;  %v2288_v59 = vpop.eup %2287  ;;  %v1336_v5 = vadd.f32 1.0, %v2286_v56  ;;  %v2262_v54 = vld [vmem:[#allocation14 + $0x28] sm:$0xff]  }
 0x2e9   : > { %2291 = vrcp.f32 %v1330_v55  ;;  %v2264_v55 = vld [vmem:[#allocation14 + $0x38] sm:$0xff]  }
 0x2ea   : > { %2293 = vrcp.f32 %v1336_v5  ;;  %v1947_v56 = vld [vmem:[%s2888_s28 + $0xc] sm:$0xf] }
 0x2f2   : > { %v2290_v60 = vpop.eup %2289 }
 0x2f3   : > { %v2292_v2 = vpop.eup %2291  ;;  %v1339_v4 = vmul.f32 %v2290_v60, %v2288_v59  ;;  %v832_v59 = vrot.slane %v1947_v56, %v3078_v63  ;;  %v836_v60 = vrot.slane %v1947_v56, %v3081_v1 }
 0x2f4   : > { %v1338_v6 = vmul.f32 %v2292_v2, %v3091_v16  ;;  %v2294_v53 = vpop.eup %2293 }
 0x2f6   : > { %v3140_v7 = vadd.f32 %v1339_v4, %v1338_v6 }
 0x2f8   : > { %2295 = vtanh.f32 %v3140_v7 }
 0x302   : > { %v2296_v61 = vpop.eup %2295 }
 0x303   : > { %v3143_v11 = vmul.f32 %v2296_v61, %v2294_v53  ;;  %v844_v61 = vrot.slane %v1947_v56, %v3087_v36 }
 0x305   : > { %v1349_v62 = vpack.c.bf16 %v3143_v11, %v3143_v11  ;;  %v1579_v57 = vpack.c.bf16 %v3143_v11, %v3094_v31  ;;  %v2263_v31 = vld [vmem:[#allocation14 + $0x30] sm:$0xff]  }
 0x307   : > { %1383 = vmatmul.mubr.bf16.vlgmr.msra.gmra.mrb[0].mxu0 %v1349_v62  ;;  %1424 = vmatmul.mubr.bf16.vlgmr.msra.gmra.mrb[16].mxu1 %v1349_v62 }
 0x308   : > { %1465 = vmatpush1.bf16.msra.mxu0 %v2921_v14  ;;  %1506 = vmatpush1.bf16.msra.mxu1 %v2990_v38 }
 0x309   : > { %1466 = vmatprep.subr.bf16.mxu0 %v2923_v15  ;;  %1507 = vmatprep.subr.bf16.mxu1 %v2992_v39 }
 0x30a   : > { %1496 = vmatprep.mubr.bf16.mxu0 %v2591_v3  ;;  %1537 = vmatprep.mubr.bf16.mxu1 %v2591_v3  ;;  %v1936_v3 = vld [vmem:[%s2888_s28 + $0x8] sm:$0xf] }
 0x30b   : > { %v697_v14 = vrot.slane %v1936_v3, %v3078_v63  ;;  %v701_v15 = vrot.slane %v1936_v3, %v3081_v1  ;;  %v840_v1 = vrot.slane %v1947_v56, %v3085_v28 }
 0x30c   : > { %1467 = vmatpush1.bf16.msra.mxu0 %v2931_v17  ;;  %1508 = vmatpush1.bf16.msra.mxu1 %v2998_v40 }
 0x30d   : > { %1468 = vmatprep.subr.bf16.mxu0 %v2935_v18  ;;  %1509 = vmatprep.subr.bf16.mxu1 %v3002_v41 }
 0x310   : > { %1469 = vmatpush1.bf16.msra.mxu0 %v2940_v20  ;;  %1510 = vmatpush1.bf16.msra.mxu1 %v3008_v42  ;;  %v705_v42 = vrot.slane %v1936_v3, %v3085_v28 }
 0x311   : > { %1470 = vmatprep.subr.bf16.mxu0 %v2943_v21  ;;  %1511 = vmatprep.subr.bf16.mxu1 %v3011_v43 }
 0x314   : > { %1471 = vmatpush1.bf16.msra.mxu0 %v2949_v23  ;;  %1512 = vmatpush1.bf16.msra.mxu1 %v3016_v44 }
 0x315   : > { %1472 = vmatprep.subr.bf16.mxu0 %v2953_v24  ;;  %1513 = vmatprep.subr.bf16.mxu1 %v3019_v45 }
 0x318   : > { %1473 = vmatpush1.bf16.msra.mxu0 %v2957_v26  ;;  %1514 = vmatpush1.bf16.msra.mxu1 %v3024_v46  ;;  %v709_v26 = vrot.slane %v1936_v3, %v3087_v36 }
 0x319   : > { %1474 = vmatprep.subr.bf16.mxu0 %v2960_v27  ;;  %1515 = vmatprep.subr.bf16.mxu1 %v3027_v47 }
 0x31c   : > { %1475 = vmatpush1.bf16.msra.mxu0 %v2966_v29  ;;  %1516 = vmatpush1.bf16.msra.mxu1 %v3032_v48 }
 0x31d   : > { %1476 = vmatprep.subr.bf16.mxu0 %v2968_v30  ;;  %1517 = vmatprep.subr.bf16.mxu1 %v3035_v49 }
 0x320   : > { %1477 = vmatpush1.bf16.msra.mxu0 %v2973_v32  ;;  %1518 = vmatpush1.bf16.msra.mxu1 %v3040_v50 }
 0x321   : > { %1478 = vmatprep.subr.bf16.mxu0 %v2975_v33  ;;  %1519 = vmatprep.subr.bf16.mxu1 %v3043_v51 }
 0x324   : > { %1479 = vmatpush1.bf16.msra.mxu0 %v2984_v35  ;;  %1520 = vmatpush1.bf16.msra.mxu1 %v3048_v52 }
 0x325   : > { %2015 = vmatprep.subr.bf16.mxu0 %v2257_v58 }
 0x3da   : > { %v1384_v17 = vpop.f32.mrb[0].mxu0  ;;  %v1425_v18 = vpop.f32.mrb[16].mxu1 }
 0x3db   : > { %v2047_v20 = vadd.f32 %v1384_v17, %v697_v14  ;;  %v1386_v21 = vpop.f32.mrb[1].mxu0  ;;  %v1427_v23 = vpop.f32.mrb[17].mxu1  ;;  %v2049_v44 = vadd.f32 %v1425_v18, %v705_v42 }
 0x3dc   : > { %v2048_v24 = vadd.f32 %v1386_v21, %v701_v15  ;;  %v1388_v27 = vpop.f32.mrb[2].mxu0  ;;  %v1429_v29 = vpop.f32.mrb[18].mxu1  ;;  %v2050_v40 = vadd.f32 %v1427_v23, %v709_v26 }
 0x3dd   : > { %v1436_v30 = vsub.f32 0.0, %v2047_v20  ;;  %v1389_v32 = vpop.f32.mrb[3].mxu0  ;;  %v1430_v33 = vpop.f32.mrb[19].mxu1 }
 0x3de   : > { %v1441_v35 = vsub.f32 0.0, %v2048_v24  ;;  %v1447_v41 = vsub.f32 0.0, %v2050_v40 }
 0x3df   : > { %v1437_v38 = vmul.f32 1.442695, %v1436_v30 }
 0x3e0   : > { %v1442_v39 = vmul.f32 1.442695, %v1441_v35  ;;  %v1448_v43 = vmul.f32 1.442695, %v1447_v41 }
 0x3e1   : > { %2297 = vpow2.f32 %v1437_v38 }
 0x3e2   : > { %2299 = vpow2.f32 %v1442_v39 }
 0x3e3   : > { %2301 = vpow2.f32 %v1448_v43 }
 0x3e4   : > { %2303 = vtanh.f32 %v2049_v44 }
 0x3eb   : > { %v2298_v45 = vpop.eup %2297 }
 0x3ec   : > { %v2300_v46 = vpop.eup %2299  ;;  %v1439_v47 = vadd.f32 1.0, %v2298_v45  ;;  %v1986_v45 = vld [vmem:[%s3269_s5] ss:$0 sm:$0xff] }
 0x3ed   : > { %v1444_v48 = vadd.f32 1.0, %v2300_v46  ;;  %v2302_v49 = vpop.eup %2301 }
 0x3ee   : > { %2305 = vrcp.f32 %v1439_v47  ;;  %v2304_v50 = vpop.eup %2303  ;;  %v1450_v34 = vadd.f32 1.0, %v2302_v49 }
 0x3ef   : > { %2307 = vrcp.f32 %v1444_v48 }
 0x3f0   : > { %2309 = vrcp.f32 %v1450_v34 }
 0x3f8   : > { %v2306_v51 = vpop.eup %2305 }
 0x3f9   : > { %v2308_v52 = vpop.eup %2307  ;;  %v1453_v16 = vmul.f32 %v2306_v51, %v2304_v50 }
 0x3fa   : > { %v1452_v8 = vmul.f32 %v2308_v52, %v3140_v7  ;;  %v2310_v10 = vpop.eup %2309 }
 0x3fc   : > { %v3185_v9 = vadd.f32 %v1453_v16, %v1452_v8 }
 0x3fe   : > { %2311 = vtanh.f32 %v3185_v9 }
 0x408   : > { %v2312_v12 = vpop.eup %2311 }
 0x409   : > { %v3188_v13 = vmul.f32 %v2312_v12, %v2310_v10 }
 0x40b   : > { %v1463_v0 = vpack.c.bf16 %v3188_v13, %v3188_v13 }
 0x40d   : > { %1497 = vmatmul.mubr.bf16.vlgmr.msra.gmra.mrb[4].mxu0 %v1463_v0  ;;  %1538 = vmatmul.mubr.bf16.vlgmr.msra.gmra.mrb[20].mxu1 %v1463_v0 }
 0x40e   : > { %2031 = vmatprep.mubr.bf16.mxu0 %v1579_v57  ;;  %2016 = vmatpush3.bf16.msra.mxu0 %v2257_v58 }
 0x40f   : > { %2017 = vmatprep.subr.bf16.mxu0 %v2258_v19 }
 0x412   : > { %2018 = vmatpush3.bf16.msra.mxu0 %v2258_v19 }
 0x413   : > { %2019 = vmatprep.subr.bf16.mxu0 %v2259_v22 }
 0x416   : > { %2020 = vmatpush3.bf16.msra.mxu0 %v2259_v22 }
 0x417   : > { %2021 = vmatprep.subr.bf16.mxu0 %v2260_v25 }
 0x41a   : > { %2022 = vmatpush3.bf16.msra.mxu0 %v2260_v25 }
 0x41b   : > { %2023 = vmatprep.subr.bf16.mxu0 %v2261_v37 }
 0x41e   : > { %2024 = vmatpush3.bf16.msra.mxu0 %v2261_v37 }
 0x41f   : > { %2025 = vmatprep.subr.bf16.mxu0 %v2262_v54 }
 0x422   : > { %2026 = vmatpush3.bf16.msra.mxu0 %v2262_v54 }
 0x423   : > { %2027 = vmatprep.subr.bf16.mxu0 %v2263_v31 }
 0x426   : > { %2028 = vmatpush3.bf16.msra.mxu0 %v2263_v31 }
 0x427   : > { %2029 = vmatprep.subr.bf16.mxu0 %v2264_v55 }
 0x42a   : > { %2030 = vmatpush3.bf16.msra.mxu0 %v2264_v55 }
 0x4e0   : > { %v1498_v2 = vpop.f32.mrb[4].mxu0  ;;  %v1539_v4 = vpop.f32.mrb[20].mxu1 }
 0x4e1   : > { %v2051_v5 = vadd.f32 %v1498_v2, %v832_v59  ;;  %v1500_v6 = vpop.f32.mrb[5].mxu0  ;;  %v1541_v7 = vpop.f32.mrb[21].mxu1  ;;  %v2053_v24 = vadd.f32 %v1539_v4, %v840_v1 }
 0x4e2   : > { %v2052_v53 = vadd.f32 %v1500_v6, %v836_v60  ;;  %v1502_v11 = vpop.f32.mrb[6].mxu0  ;;  %v1543_v62 = vpop.f32.mrb[22].mxu1  ;;  %v2054_v21 = vadd.f32 %v1541_v7, %v844_v61 }
 0x4e3   : > { %v1550_v3 = vsub.f32 0.0, %v2051_v5  ;;  %v1503_v14 = vpop.f32.mrb[7].mxu0  ;;  %v1544_v15 = vpop.f32.mrb[23].mxu1 }
 0x4e4   : > { %v1555_v17 = vsub.f32 0.0, %v2052_v53  ;;  %v1561_v63 = vsub.f32 0.0, %v2054_v21 }
 0x4e5   : > { %v1551_v18 = vmul.f32 1.442695, %v1550_v3 }
 0x4e6   : > { %v1556_v20 = vmul.f32 1.442695, %v1555_v17  ;;  %v1562_v23 = vmul.f32 1.442695, %v1561_v63 }
 0x4e7   : > { %2313 = vpow2.f32 %v1551_v18 }
 0x4e8   : > { %2315 = vpow2.f32 %v1556_v20 }
 0x4e9   : > { %2317 = vpow2.f32 %v1562_v23 }
 0x4ea   : > { %2319 = vtanh.f32 %v2053_v24 }
 0x4f1   : > { %v2314_v26 = vpop.eup %2313 }
 0x4f2   : > { %v2316_v27 = vpop.eup %2315  ;;  %v1553_v29 = vadd.f32 1.0, %v2314_v26 }
 0x4f3   : > { %v1558_v36 = vadd.f32 1.0, %v2316_v27  ;;  %v2318_v30 = vpop.eup %2317 }
 0x4f4   : > { %2321 = vrcp.f32 %v1553_v29  ;;  %v2320_v32 = vpop.eup %2319  ;;  %v1564_v39 = vadd.f32 1.0, %v2318_v30 }
 0x4f5   : > { %2323 = vrcp.f32 %v1558_v36 }
 0x4f6   : > { %2325 = vrcp.f32 %v1564_v39 }
 0x4fe   : > { %v2322_v33 = vpop.eup %2321 }
 0x4ff   : > { %v2324_v35 = vpop.eup %2323  ;;  %v1567_v38 = vmul.f32 %v2322_v33, %v2320_v32 }
 0x500   : > { %v1566_v40 = vmul.f32 %v2324_v35, %v3185_v9  ;;  %v2326_v28 = vpop.eup %2325 }
 0x502   : > { %v1568_v41 = vadd.f32 %v1567_v38, %v1566_v40 }
 0x504   : > { %2327 = vtanh.f32 %v1568_v41  ;;  %1574 = vst [vmem:[#allocation3] sm:$0xff] %v1568_v41 }
 0x50e   : > { %v2328_v42 = vpop.eup %2327 }
 0x50f   : > { %v1570_v43 = vmul.f32 %v2328_v42, %v2326_v28 }
 0x511   : > { %1573 = vst [vmem:[#allocation2] sm:$0xff] %v1570_v43  ;;  %v1580_v44 = vpack.c.bf16 %v1570_v43, %v3188_v13 }
 0x513   : > { %2032 = vmatmul.mubr.bf16.vlgmr.msra.gmra.mrb[16].mxu0 %v1580_v44 }
 0x5e6   : > { %v2033_v46 = vpop.f32.mrb[16].mxu0 }
 0x5e7   : > { %v1695_v47 = vadd.f32 %v2033_v46, %v1986_v45  ;;  %v1686_v48 = vpop.f32.mrb[17].mxu0 }
 0x5e8   : > { %v1687_v49 = vadd.f32 %v1986_v45, %v1686_v48  ;;  %v2034_v50 = vpop.f32.mrb[18].mxu0 }
 0x5e9   : > { %1705 = vmax.xlane.f32.xlu1 %v1695_v47  ;;  %v1689_v51 = vpop.f32.mrb[19].mxu0  ;;  %v1698_v52 = vadd.f32 %v2034_v50, %v1986_v45 }
 0x5ea   : > { %1701 = vmax.xlane.f32.xlu0 %v1687_v49  ;;  %v1690_v16 = vadd.f32 %v1986_v45, %v1689_v51 }
 0x5ed   : > { %1707 = vmax.xlane.f32.xlu1 %v1698_v52 }
 0x5ee   : > { %1703 = vmax.xlane.f32.xlu0 %v1690_v16 }
 0x676   : > { %v1706_v34 = vpop.xlane.xlu1 %1705 }
 0x677   : > { %v1711_v8 = vsub.f32 %v1695_v47, %v1706_v34  ;;  %v1702_v9 = vpop.xlane.xlu0 %1701 }
 0x678   : > { %v1709_v10 = vsub.f32 %v1687_v49, %v1702_v9 }
 0x679   : > { %v1717_v0 = vmul.f32 1.442695, %v1711_v8 }
 0x67a   : > { %v1713_v12 = vmul.f32 1.442695, %v1709_v10  ;;  %v1708_v13 = vpop.xlane.xlu1 %1707 }
 0x67b   : > { %v1704_v57 = vpop.xlane.xlu0 %1703  ;;  %v1712_v58 = vsub.f32 %v1698_v52, %v1708_v13 }
 0x67c   : > { %2329 = vpow2.f32 %v1713_v12  ;;  %v1710_v19 = vsub.f32 %v1690_v16, %v1704_v57 }
 0x67d   : > { %2331 = vpow2.f32 %v1717_v0  ;;  %v1719_v25 = vmul.f32 1.442695, %v1712_v58 }
 0x67e   : > { %v1715_v22 = vmul.f32 1.442695, %v1710_v19 }
 0x680   : > { %2333 = vpow2.f32 %v1715_v22 }
 0x681   : > { %2335 = vpow2.f32 %v1719_v25 }
 0x686   : > { %v2330_v37 = vpop.eup %2329 }
 0x687   : > { %1721 = vadd.xlane.f32.xlu0 %v2330_v37  ;;  %v2332_v54 = vpop.eup %2331 }
 0x68a   : > { %v2334_v31 = vpop.eup %2333 }
 0x68b   : > { %1725 = vadd.xlane.f32.xlu0 %v2332_v54  ;;  %1723 = vadd.xlane.f32.xlu1 %v2334_v31  ;;  %v2336_v55 = vpop.eup %2335 }
 0x68f   : > { %1727 = vadd.xlane.f32.xlu1 %v2336_v55 }
 0x714   : > { %v1722_v56 = vpop.xlane.xlu0 %1721 }
 0x715   : > { %2337 = vrcp.f32 %v1722_v56 }
 0x718   : > { %v1724_v59 = vpop.xlane.xlu1 %1723  ;;  %v1726_v60 = vpop.xlane.xlu0 %1725 }
 0x719   : > { %2339 = vrcp.f32 %v1724_v59 }
 0x71a   : > { %2341 = vrcp.f32 %v1726_v60 }
 0x71c   : > { %v1728_v2 = vpop.xlane.xlu1 %1727 }
 0x71d   : > { %2343 = vrcp.f32 %v1728_v2 }
 0x71f   : > { %v2338_v4 = vpop.eup %2337 }
 0x720   : > { %v1733_v5 = vmul.f32 %v2338_v4, %v2330_v37 }
 0x722   : > { %1737 = vst [vmem:[%s2895_s3] sm:$0xff] %v1733_v5 }
 0x723   : > { %v2340_v6 = vpop.eup %2339 }
 0x724   : > { %v2342_v7 = vpop.eup %2341  ;;  %v1734_v53 = vmul.f32 %v2340_v6, %v2334_v31 }
 0x725   : > { %v1735_v61 = vmul.f32 %v2342_v7, %v2332_v54 }
 0x726   : > { %1738 = vst [vmem:[%s2895_s3 + $0x8] sm:$0xff] %v1734_v53 }
 0x727   : > { %v2344_v11 = vpop.eup %2343  ;;  %1739 = vst [vmem:[%s2895_s3 + $0x10] sm:$0xff] %v1735_v61 }
 0x728   : > { %v1736_v62 = vmul.f32 %v2344_v11, %v2336_v55 }
 0x72a   : > { %1740 = vst [vmem:[%s2895_s3 + $0x18] sm:$0xff] %v1736_v62 }
 0x72b   : > { %2502 = shalt.err (!%p2499_p1)
}
 0x72c   : > { %s2503_s9 = scalar_lea.hbm %s3212_s11, 512  ;;  %s2507_s1 = scalar_lea.hbm %s3321_s8, 1024 }
 0x72d   : > { %p2504_p12 = scmp.ne.s32.totalorder %s3212_s11, %s2503_s9  ;;  %p2508_p5 = scmp.lt.u32.totalorder %s3212_s11, %s3321_s8 }
 0x72e   : > { %p2509_p9 = scmp.lt.u32.totalorder %s2507_s1, %s2503_s9  ;;  %p2511_p4 = scmp.lt.u32.totalorder %s2503_s9, %s3212_s11 }
 0x72f   : > { %p2505_p0 = pnand %p2504_p12, %p3322_p6 }
 0x730   : > { %p2510_p2 = por %p2509_p9, %p2508_p5 }
 0x731   : > { %p2506_p3 = pneg %p2505_p0 }
 0x732   : > { %p2512_p13 = por %p2511_p4, %p2510_p2 }
 0x734   : > { %p2513_p10 = pnand %p2512_p13, %p2506_p3 }
 0x736   : > { %2516 = shalt.err (!%p2513_p10)
}
 0x737   : > { %s2593_s7 = smov 128   ;;  %s2594_s28 = smov 8  }
 0x738   : > { %2095 = dma.vmem_to_hbm [thread:$0]  (%p3322_p6), %s3214_s26, 512, %s3212_s11, %s1742_s15, %s2593_s7, %s2593_s7, %s2594_s28  }
 0x739 PF: > { %s3323_s13 = sld [smem:[#allocation20_spill]]  ;;  %s3324_s3 = sld [smem:[#allocation23_spill]] }
 0x73a   : > { %s3325_s27 = sld [smem:[#allocation22_spill]] }
 0x73f   : > { %s1771_s29 = sand.u32 1, %s3323_s13   ;;  %p3326_p7 = scmp.ne.s32.totalorder %s3324_s3, 0 }
 0x740   : > { %p3327_p11 = scmp.ge.s32.totalorder %s3325_s27, 2  ;;  %s1772_s21 = scalar_lea.sflag [#allocation8], %s1771_s29 }
 0x742   : > { %p2115_p8 = pnand %p3327_p11, %p3326_p7 }
 0x744   : > { %2554 = dma.done.wait (!%p2115_p8), %s1772_s21, 512  }
 0x745   : > { %2556 = vsyncadd (!%p2115_p8), %s1772_s21, 4294966784  ;;  %s24_s26 = sadd.s32 1, %s3325_s27   ;;  %s3328_s20 = sld [smem:[#allocation21_spill]] }
 0x746   : > { %p21_p1 = scmp.ge.s32.totalorder %s24_s26, 4   ;;  %s3329_s23 = sld [smem:[#allocation25_spill]] }
 0x747   : > { %s3330_s16 = sld [smem:[#allocation24_spill]]  ;;  %s3331_s21 = smov %s2563_s22 }
 0x748   : > { %s3333_s24 = smov %s2575_s25  ;;  %23 = sbr.rel (!%p21_p1) target bundleno = 12 (0xc), region = 130 }
 0x74b   : > { %s3332_s22 = smov %s3328_s20 }
 0x74d   : > { %s3334_s25 = smov %s3330_s16 }
 0x74f   :  { %1777 = vsyncpa [#allocation7], 1 }
 0x750   :  { %1779 = vsyncpa [#allocation7 + $0x1], 1 }
 0x751   :  { %1780 = vsyncpa [#allocation10], 1 }
 0x752   :  { %1782 = vsyncpa [#allocation10 + $0x1], 1 }
 0x753   :  { %1783 = vsyncpa [#allocation13], 1 }
 0x754   :  { %1784 = vsyncpa [#allocation8], 1 }
 0x755   :  { %1786 = vsyncpa [#allocation8 + $0x1], 1 }

</bundles_post_ra>
